<compile_context>
chip_gen: v5e
topology: v5e:2x2
jax: 0.10.0
libtpu: 0.0.40
codegen_flags: <defaults>
</compile_context>

<pallas_src>
import numpy as np
import jax
import jax.numpy as jnp
from jax import lax
from jax.experimental import pallas as pl
from jax.experimental.pallas import tpu as pltpu

LRELU_SLOPE = 0.3
TEMPERATURE = 0.0005
_VMEM_LIMIT = 48 * 1024 * 1024  # explicit scoped-VMEM budget (safe on v5e/v6e/v7x)


# ----------------------------------------------------------------------------
# Fused conv stack: n_layers x (Conv1d("same") + bias + LeakyReLU), one batch
# element per grid step.  Intermediates never leave VMEM.
# ----------------------------------------------------------------------------
def make_conv_stack_kernel(K, T, n_layers):
    pad = K // 2

    def kernel(*refs):
        # refs = (x, w1, b1, ..., wL, bL, out, halo_buf1, ..., halo_bufL)
        x_ref = refs[0]
        w_refs = refs[1:1 + 2 * n_layers:2]          # (K*Cin_l, Cout_l)  bf16
        b_refs = refs[2:2 + 2 * n_layers:2]          # (1, Cout_l)        f32
        o_ref = refs[1 + 2 * n_layers]               # (1, T, Cout_last)
        buf_refs = refs[2 + 2 * n_layers:]           # VMEM (T+2*pad, Cin_l)

        cur = x_ref[0].astype(jnp.float32)           # (T, Cin_0)
        for l in range(n_layers):
            buf = buf_refs[l]
            cin = buf.shape[1]
            # Zero ONLY the halo rows; the interior is fully overwritten below.
            buf[0:pad, :] = jnp.zeros((pad, cin), jnp.float32)
            buf[pad + T:pad + T + pad, :] = jnp.zeros((pad, cin), jnp.float32)
            buf[pad:pad + T, :] = cur
            # im2col window: (T, K*Cin) built from K static shifted slices.
            xw = jnp.concatenate([buf[k:k + T, :] for k in range(K)], axis=1)
            # single MXU dot, bf16 inputs, f32 accumulate.
            acc = jnp.dot(xw.astype(jnp.bfloat16), w_refs[l][...],
                          preferred_element_type=jnp.float32)
            acc = acc + b_refs[l][...]               # (T, Cout) + (1, Cout)
            cur = jnp.where(acc >= 0.0, acc, LRELU_SLOPE * acc)   # LeakyReLU
        o_ref[0] = cur.astype(o_ref.dtype)

    return kernel


def conv_stack(x, weights, biases, K):
    """x: (B, T, Cin0); weights[l]: (K, Cin_l, Cout_l); biases[l]: (Cout_l,)."""
    B, T, Cin0 = x.shape
    n_layers = len(weights)
    pad = K // 2
    Tp = T + 2 * pad
    cins = [int(w.shape[1]) for w in weights]
    Cout = int(weights[-1].shape[2])

    # im2col weight layout: (K, Cin, Cout) -> (K*Cin, Cout), cast once to bf16.
    w_flat = [w.reshape(K * w.shape[1], w.shape[2]).astype(jnp.bfloat16)
              for w in weights]
    b_2d = [b.reshape(1, -1).astype(jnp.float32) for b in biases]

    in_specs = [pl.BlockSpec((1, T, Cin0), lambda b: (b, 0, 0))]
    args = [x]
    for l in range(n_layers):
        in_specs.append(pl.BlockSpec(w_flat[l].shape, lambda b: (0, 0)))
        in_specs.append(pl.BlockSpec(b_2d[l].shape, lambda b: (0, 0)))
        args += [w_flat[l], b_2d[l]]

    scratch = [pltpu.VMEM((Tp, cins[l]), jnp.float32) for l in range(n_layers)]

    return pl.pallas_call(
        make_conv_stack_kernel(K, T, n_layers),
        out_shape=jax.ShapeDtypeStruct((B, T, Cout), jnp.float32),
        grid=(B,),
        in_specs=in_specs,
        out_specs=pl.BlockSpec((1, T, Cout), lambda b: (b, 0, 0)),
        scratch_shapes=scratch,
        compiler_params=pltpu.CompilerParams(
            dimension_semantics=("parallel",),
            vmem_limit_bytes=_VMEM_LIMIT),
    )(*args)


# ----------------------------------------------------------------------------
# Attention kernel:
#   dist[t2,t1] = sum_h (q[t2,h] - k[t1,h])^2    (expanded -> MXU)
#   attn        = -temperature * dist            (padded T1 cols -> -inf)
#   logprob     = log_softmax(attn, -1) + log(prior + 1e-8)
#   soft        = softmax(logprob, -1)
#                 == (exp(attn - max) * (prior + 1e-8)) / row_sum   (reuses exp)
# Lane-dense: T1 is padded to a multiple of 128; padded columns are masked to
# -inf before the softmaxes and sliced off in the wrapper.
# ----------------------------------------------------------------------------
def make_attn_kernel(T1, T1p):
    def kernel(q_ref, k_ref, prior_ref, logprob_ref, soft_ref):
        q = q_ref[0].astype(jnp.float32)          # (tq, H)
        k = k_ref[0].astype(jnp.float32)          # (T1p, H)  (zero-padded rows)
        H = q.shape[1]

        qq = jnp.sum(q * q, axis=-1, keepdims=True)                  # (tq, 1)
        # (1, T1p) row of sum_h k^2 via a ones-matvec (no transpose/relayout).
        kk = lax.dot_general(jnp.ones((1, H), jnp.float32), k * k,
                             (((1,), (1,)), ((), ())),
                             preferred_element_type=jnp.float32)     # (1, T1p)
        # q.k^T contracting H directly (no explicit .T on k).
        qk = lax.dot_general(q, k, (((1,), (1,)), ((), ())),
                             preferred_element_type=jnp.float32)     # (tq, T1p)

        attn = -TEMPERATURE * (qq + kk - 2.0 * qk)
        if T1p > T1:
            col = lax.broadcasted_iota(jnp.int32, attn.shape, 1)
            attn = jnp.where(col < T1, attn, -jnp.inf)               # mask pad cols

        prior = prior_ref[0].astype(jnp.float32) + 1e-8

        # log_softmax over the (masked) text axis.
        m = jnp.max(attn, axis=-1, keepdims=True)
        ex = jnp.exp(attn - m)                                       # single exp
        lse = jnp.log(jnp.sum(ex, axis=-1, keepdims=True)) + m
        logprob_ref[0] = (attn - lse) + jnp.log(prior)

        # NOTE: the reference calls attn.masked_fill(...) (NOT in-place) and
        # drops the result, so enc_mask has no effect on the softmax.
        # Reproduced here (enc_mask unused).
        #
        # softmax(log_softmax(attn) + log(prior)) == ex*prior / sum(ex*prior);
        # reuses ex from above (saves one exp per element and one row-max).
        w = ex * prior
        soft_ref[0] = w * pl.reciprocal(
            jnp.sum(w, axis=-1, keepdims=True), approx=True)

    return kernel


def attention_pallas(q_enc, k_enc, prior_t):
    """q_enc: (B, T2, H), k_enc: (B, T1, H), prior_t: (B, T2, T1)."""
    B, T2, H = q_enc.shape
    _, T1, _ = k_enc.shape
    T1p = ((T1 + 127) // 128) * 128        # lane-dense output last dim

    if T1p > T1:
        k_pad = jnp.pad(k_enc, ((0, 0), (0, T1p - T1), (0, 0)))
        prior_pad = jnp.pad(prior_t, ((0, 0), (0, 0), (0, T1p - T1)))
    else:
        k_pad, prior_pad = k_enc, prior_t

    # Tile T2 so VMEM stays bounded at production lengths and megacore chips
    # get more than B parallel grid points.
    tq = T2 if T2 <= 512 else 512
    grid = (B, pl.cdiv(T2, tq))

    logp, soft = pl.pallas_call(
        make_attn_kernel(T1, T1p),
        out_shape=(jax.ShapeDtypeStruct((B, T2, T1p), jnp.float32),
                   jax.ShapeDtypeStruct((B, T2, T1p), jnp.float32)),
        grid=grid,
        in_specs=[
            pl.BlockSpec((1, tq, H), lambda b, qi: (b, qi, 0)),
            pl.BlockSpec((1, T1p, H), lambda b, qi: (b, 0, 0)),
            pl.BlockSpec((1, tq, T1p), lambda b, qi: (b, qi, 0)),
        ],
        out_specs=(
            pl.BlockSpec((1, tq, T1p), lambda b, qi: (b, qi, 0)),
            pl.BlockSpec((1, tq, T1p), lambda b, qi: (b, qi, 0)),
        ),
        compiler_params=pltpu.CompilerParams(
            dimension_semantics=("parallel", "parallel"),
            vmem_limit_bytes=_VMEM_LIMIT),
    )(q_enc, k_pad, prior_pad)

    if T1p > T1:
        logp = logp[:, :, :T1]
        soft = soft[:, :, :T1]
    return logp, soft


# ----------------------------------------------------------------------------
# MAS binarization (host-side DP, matches the reference numba implementation;
# the original module also runs this on CPU via .cpu().numpy()).
# TODO(synk): sequential DP has no clean Pallas mapping; kept on host like the
# reference.
# ----------------------------------------------------------------------------
def mas_width1(attn_map):
    opt = np.zeros_like(attn_map)
    attn_map = np.log(attn_map)
    attn_map[0, 1:] = -np.inf
    log_p = np.zeros_like(attn_map)
    log_p[0, :] = attn_map[0, :]
    prev_ind = np.zeros(attn_map.shape, dtype=np.int64)
    for i in range(1, attn_map.shape[0]):
        for j in range(attn_map.shape[1]):
            prev_log = log_p[i - 1, j]
            prev_j = j
            if j - 1 >= 0 and log_p[i - 1, j - 1] >= log_p[i - 1, j]:
                prev_log = log_p[i - 1, j - 1]
                prev_j = j - 1
            log_p[i, j] = attn_map[i, j] + prev_log
            prev_ind[i, j] = prev_j
    curr_text_idx = attn_map.shape[1] - 1
    for i in range(attn_map.shape[0] - 1, -1, -1):
        opt[i, curr_text_idx] = 1
        curr_text_idx = prev_ind[i, curr_text_idx]
    opt[0, curr_text_idx] = 1
    return opt


def b_mas(b_attn_map, in_lens, out_lens, width=1):
    assert width == 1
    attn_out = np.zeros_like(b_attn_map)
    for b in range(b_attn_map.shape[0]):
        out = mas_width1(b_attn_map[b, 0, :out_lens[b], :in_lens[b]])
        attn_out[b, 0, :out_lens[b], :in_lens[b]] = out
    return attn_out


# ----------------------------------------------------------------------------
# Parameter init (deterministic, synthetic) and the Aligner forward pass.
# ----------------------------------------------------------------------------
def init_conv(key, cin, cout, k):
    kw, kb = jax.random.split(key)
    scale = 1.0 / np.sqrt(cin * k)
    w = jax.random.uniform(kw, (k, cin, cout), jnp.float32, -scale, scale)
    b = jax.random.uniform(kb, (cout,), jnp.float32, -scale, scale)
    return w, b


def init_aligner_params(key, d_enc_in, d_dec_in, d_hidden,
                        kernel_size_enc=3, kernel_size_dec=7):
    keys = jax.random.split(key, 5)
    p = {}
    p["key_w1"], p["key_b1"] = init_conv(keys[0], d_enc_in, d_hidden, kernel_size_enc)
    p["key_w2"], p["key_b2"] = init_conv(keys[1], d_hidden, d_hidden, kernel_size_enc)
    p["q_w1"], p["q_b1"] = init_conv(keys[2], d_dec_in, d_hidden, kernel_size_dec)
    p["q_w2"], p["q_b2"] = init_conv(keys[3], d_hidden, d_hidden, kernel_size_dec)
    p["q_w3"], p["q_b3"] = init_conv(keys[4], d_hidden, d_hidden, kernel_size_dec)
    return p


@jax.jit
def aligner_device(params, enc_in, dec_in, attn_prior):
    """Device part: fused conv stacks + attention. Returns (logprob, soft)."""
    keys = jnp.transpose(enc_in, (0, 2, 1))      # (B, T1, C1)
    queries = jnp.transpose(dec_in, (0, 2, 1))   # (B, T2, C2)

    # key_proj: two k=3 convs + LeakyReLU, fused into ONE pallas_call.
    keys_enc = conv_stack(
        keys,
        [params["key_w1"], params["key_w2"]],
        [params["key_b1"], params["key_b2"]],
        K=3)                                                         # (B, T1, H)

    # query_proj: three k=7 convs + LeakyReLU, fused into ONE pallas_call.
    queries_enc = conv_stack(
        queries,
        [params["q_w1"], params["q_w2"], params["q_w3"]],
        [params["q_b1"], params["q_b2"], params["q_b3"]],
        K=7)                                                         # (B, T2, H)

    prior_t = jnp.transpose(attn_prior, (0, 2, 1))                   # (B, T2, T1)
    logprob, soft = attention_pallas(queries_enc, keys_enc, prior_t)
    return logprob[:, None], soft[:, None]       # (B, 1, T2, T1) each


def aligner_forward(params, enc_in, dec_in, enc_len, dec_len, enc_mask, attn_prior):
    """
    enc_in: (B, C1, T1), dec_in: (B, C2, T2), attn_prior: (B, T1, T2).
    Returns (attn_logprob, attn_soft, attn_hard, attn_hard_dur) as in PyTorch.
    """
    attn_logprob, attn_soft = aligner_device(params, enc_in, dec_in, attn_prior)
    # enc_mask intentionally unused: reference's non-inplace masked_fill is a no-op.

    # MAS binarization (host-side, non-differentiable in the original too).
    attn_hard_np = b_mas(np.asarray(attn_soft, dtype=np.float32),
                         np.asarray(enc_len), np.asarray(dec_len), width=1)
    attn_hard = jnp.asarray(attn_hard_np)
    attn_hard_dur = attn_hard.sum(2)[:, 0, :]    # (B, T1)
    return attn_logprob, attn_soft, attn_hard, attn_hard_dur


if __name__ == "__main__":
    key = jax.random.PRNGKey(0)
    k_param, k_enc, k_dec, k_prior = jax.random.split(key, 4)

    B = 2
    d_enc_in, d_dec_in, d_hidden = 8, 16, 32
    T1, T2 = 16, 24   # text length, mel length

    params = init_aligner_params(k_param, d_enc_in, d_dec_in, d_hidden)

    enc_in = jax.random.normal(k_enc, (B, d_enc_in, T1), jnp.float32)
    dec_in = jax.random.normal(k_dec, (B, d_dec_in, T2), jnp.float32)
    enc_len = jnp.array([T1, T1 - 3], dtype=jnp.int32)
    dec_len = jnp.array([T2, T2 - 4], dtype=jnp.int32)
    enc_mask = jnp.arange(T1)[None, :] >= enc_len[:, None]    # (B, T1), True = pad
    attn_prior = jax.random.uniform(k_prior, (B, T1, T2), jnp.float32, 0.1, 1.0)

    outs = aligner_forward(params, enc_in, dec_in, enc_len, dec_len, enc_mask, attn_prior)
    outs = jax.block_until_ready(outs)

    attn_logprob, attn_soft, attn_hard, attn_hard_dur = outs
    assert attn_logprob.shape == (B, 1, T2, T1)
    assert attn_soft.shape == (B, 1, T2, T1)
    assert attn_hard.shape == (B, 1, T2, T1)
    assert attn_hard_dur.shape == (B, T1)
    # softmax rows must (approximately) sum to 1.
    row_sums = np.asarray(attn_soft).sum(-1)
    assert np.allclose(row_sums, 1.0, atol=5e-2), row_sums
    # hard alignment: exactly one text index per mel frame within valid lengths.
    hard_np = np.asarray(attn_hard)
    for b in range(B):
        assert np.all(hard_np[b, 0, :int(dec_len[b])].sum(-1) == 1.0)
    print("KERNEL_OK")
</pallas_src>

<mosaic_0001>
module attributes {stable_mosaic.version = 11 : i64} {
  func.func @kernel(%arg0: i32, %arg1: memref<1x24x16xf32, #tpu.memory_space<vmem>>, %arg2: memref<112x32xbf16, #tpu.memory_space<vmem>>, %arg3: memref<1x32xf32, #tpu.memory_space<vmem>>, %arg4: memref<224x32xbf16, #tpu.memory_space<vmem>>, %arg5: memref<1x32xf32, #tpu.memory_space<vmem>>, %arg6: memref<224x32xbf16, #tpu.memory_space<vmem>>, %arg7: memref<1x32xf32, #tpu.memory_space<vmem>>, %arg8: memref<1x24x32xf32, #tpu.memory_space<vmem>>, %arg9: memref<30x16xf32, #tpu.memory_space<vmem>>, %arg10: memref<30x32xf32, #tpu.memory_space<vmem>>, %arg11: memref<30x32xf32, #tpu.memory_space<vmem>>) attributes {dimension_semantics = [#tpu.dimension_semantics<parallel>], iteration_bounds = array<i64: 2>, scalar_prefetch = 0 : i64, scratch_operands = 3 : i64, tpu.core_type = #tpu.core_type<tc>, window_params = [{transform_indices = @transform_0, window_bounds = array<i64: 1, 24, 16>}, {pipeline_mode = #tpu.pipeline_mode<synchronous>, transform_indices = @transform_1, window_bounds = array<i64: 112, 32>}, {pipeline_mode = #tpu.pipeline_mode<synchronous>, transform_indices = @transform_2, window_bounds = array<i64: 1, 32>}, {pipeline_mode = #tpu.pipeline_mode<synchronous>, transform_indices = @transform_3, window_bounds = array<i64: 224, 32>}, {pipeline_mode = #tpu.pipeline_mode<synchronous>, transform_indices = @transform_4, window_bounds = array<i64: 1, 32>}, {pipeline_mode = #tpu.pipeline_mode<synchronous>, transform_indices = @transform_5, window_bounds = array<i64: 224, 32>}, {pipeline_mode = #tpu.pipeline_mode<synchronous>, transform_indices = @transform_6, window_bounds = array<i64: 1, 32>}, {transform_indices = @transform_7, window_bounds = array<i64: 1, 24, 32>}]} {
    %c0 = arith.constant 0 : index
    %c0_0 = arith.constant 0 : index
    %c0_1 = arith.constant 0 : index
    %0 = vector.load %arg1[%c0, %c0_0, %c0_1] : memref<1x24x16xf32, #tpu.memory_space<vmem>>, vector<1x24x16xf32>
    %1 = vector.shape_cast %0 : vector<1x24x16xf32> to vector<24x16xf32>
    %cst = arith.constant 0.000000e+00 : f32
    %2 = vector.broadcast %cst : f32 to vector<3x16xf32>
    %c0_2 = arith.constant 0 : index
    %c0_3 = arith.constant 0 : index
    %3 = vector.load %arg9[%c0_2, %c0_3] : memref<30x16xf32, #tpu.memory_space<vmem>>, vector<3x16xf32>
    tpu.vector_store %arg9[%c0_2, %c0_3], %2 {strides = array<i32>} : memref<30x16xf32, #tpu.memory_space<vmem>>, vector<3x16xf32>,
    %cst_4 = arith.constant 0.000000e+00 : f32
    %4 = vector.broadcast %cst_4 : f32 to vector<3x16xf32>
    %c27 = arith.constant 27 : index
    %c0_5 = arith.constant 0 : index
    %5 = vector.load %arg9[%c27, %c0_5] : memref<30x16xf32, #tpu.memory_space<vmem>>, vector<3x16xf32>
    tpu.vector_store %arg9[%c27, %c0_5], %4 {strides = array<i32>} : memref<30x16xf32, #tpu.memory_space<vmem>>, vector<3x16xf32>,
    %c3 = arith.constant 3 : index
    %c0_6 = arith.constant 0 : index
    %6 = vector.load %arg9[%c3, %c0_6] : memref<30x16xf32, #tpu.memory_space<vmem>>, vector<24x16xf32>
    tpu.vector_store %arg9[%c3, %c0_6], %1 {strides = array<i32>} : memref<30x16xf32, #tpu.memory_space<vmem>>, vector<24x16xf32>,
    %c0_7 = arith.constant 0 : index
    %c0_8 = arith.constant 0 : index
    %7 = vector.load %arg9[%c0_7, %c0_8] : memref<30x16xf32, #tpu.memory_space<vmem>>, vector<24x16xf32>
    %c1 = arith.constant 1 : index
    %c0_9 = arith.constant 0 : index
    %8 = vector.load %arg9[%c1, %c0_9] : memref<30x16xf32, #tpu.memory_space<vmem>>, vector<24x16xf32>
    %c2 = arith.constant 2 : index
    %c0_10 = arith.constant 0 : index
    %9 = vector.load %arg9[%c2, %c0_10] : memref<30x16xf32, #tpu.memory_space<vmem>>, vector<24x16xf32>
    %c3_11 = arith.constant 3 : index
    %c0_12 = arith.constant 0 : index
    %10 = vector.load %arg9[%c3_11, %c0_12] : memref<30x16xf32, #tpu.memory_space<vmem>>, vector<24x16xf32>
    %c4 = arith.constant 4 : index
    %c0_13 = arith.constant 0 : index
    %11 = vector.load %arg9[%c4, %c0_13] : memref<30x16xf32, #tpu.memory_space<vmem>>, vector<24x16xf32>
    %c5 = arith.constant 5 : index
    %c0_14 = arith.constant 0 : index
    %12 = vector.load %arg9[%c5, %c0_14] : memref<30x16xf32, #tpu.memory_space<vmem>>, vector<24x16xf32>
    %c6 = arith.constant 6 : index
    %c0_15 = arith.constant 0 : index
    %13 = vector.load %arg9[%c6, %c0_15] : memref<30x16xf32, #tpu.memory_space<vmem>>, vector<24x16xf32>
    %14 = tpu.concatenate %7, %8, %9, %10, %11, %12, %13 in 1 : vector<24x16xf32>, vector<24x16xf32>, vector<24x16xf32>, vector<24x16xf32>, vector<24x16xf32>, vector<24x16xf32>, vector<24x16xf32> -> vector<24x112xf32>
    %15 = arith.truncf %14 : vector<24x112xf32> to vector<24x112xbf16>
    %c0_16 = arith.constant 0 : index
    %c0_17 = arith.constant 0 : index
    %16 = vector.load %arg2[%c0_16, %c0_17] : memref<112x32xbf16, #tpu.memory_space<vmem>>, vector<112x32xbf16>
    %cst_18 = arith.constant dense<0.000000e+00> : vector<24x32xf32>
    %17 = tpu.matmul %15, %16, %cst_18 {dimension_numbers = #tpu.dot_dimension_numbers<[1], [0], [0], [1], [0, 0, 1, 1], [], []>} : vector<24x112xbf16>, vector<112x32xbf16>, vector<24x32xf32> -> vector<24x32xf32>
    %c0_19 = arith.constant 0 : index
    %c0_20 = arith.constant 0 : index
    %18 = vector.load %arg3[%c0_19, %c0_20] : memref<1x32xf32, #tpu.memory_space<vmem>>, vector<1x32xf32>
    %19 = vector.broadcast %18 : vector<1x32xf32> to vector<24x32xf32>
    %20 = arith.addf %17, %19 : vector<24x32xf32>
    %cst_21 = arith.constant 0.000000e+00 : f32
    %21 = vector.broadcast %cst_21 : f32 to vector<24x32xf32>
    %22 = arith.cmpf oge, %20, %21 : vector<24x32xf32>
    %cst_22 = arith.constant 3.000000e-01 : f32
    %23 = vector.broadcast %cst_22 : f32 to vector<24x32xf32>
    %24 = arith.mulf %23, %20 : vector<24x32xf32>
    %25 = arith.select %22, %20, %24 : vector<24x32xi1>, vector<24x32xf32>
    %cst_23 = arith.constant 0.000000e+00 : f32
    %26 = vector.broadcast %cst_23 : f32 to vector<3x32xf32>
    %c0_24 = arith.constant 0 : index
    %c0_25 = arith.constant 0 : index
    %27 = vector.load %arg10[%c0_24, %c0_25] : memref<30x32xf32, #tpu.memory_space<vmem>>, vector<3x32xf32>
    tpu.vector_store %arg10[%c0_24, %c0_25], %26 {strides = array<i32>} : memref<30x32xf32, #tpu.memory_space<vmem>>, vector<3x32xf32>,
    %cst_26 = arith.constant 0.000000e+00 : f32
    %28 = vector.broadcast %cst_26 : f32 to vector<3x32xf32>
    %c27_27 = arith.constant 27 : index
    %c0_28 = arith.constant 0 : index
    %29 = vector.load %arg10[%c27_27, %c0_28] : memref<30x32xf32, #tpu.memory_space<vmem>>, vector<3x32xf32>
    tpu.vector_store %arg10[%c27_27, %c0_28], %28 {strides = array<i32>} : memref<30x32xf32, #tpu.memory_space<vmem>>, vector<3x32xf32>,
    %c3_29 = arith.constant 3 : index
    %c0_30 = arith.constant 0 : index
    %30 = vector.load %arg10[%c3_29, %c0_30] : memref<30x32xf32, #tpu.memory_space<vmem>>, vector<24x32xf32>
    tpu.vector_store %arg10[%c3_29, %c0_30], %25 {strides = array<i32>} : memref<30x32xf32, #tpu.memory_space<vmem>>, vector<24x32xf32>,
    %c0_31 = arith.constant 0 : index
    %c0_32 = arith.constant 0 : index
    %31 = vector.load %arg10[%c0_31, %c0_32] : memref<30x32xf32, #tpu.memory_space<vmem>>, vector<24x32xf32>
    %c1_33 = arith.constant 1 : index
    %c0_34 = arith.constant 0 : index
    %32 = vector.load %arg10[%c1_33, %c0_34] : memref<30x32xf32, #tpu.memory_space<vmem>>, vector<24x32xf32>
    %c2_35 = arith.constant 2 : index
    %c0_36 = arith.constant 0 : index
    %33 = vector.load %arg10[%c2_35, %c0_36] : memref<30x32xf32, #tpu.memory_space<vmem>>, vector<24x32xf32>
    %c3_37 = arith.constant 3 : index
    %c0_38 = arith.constant 0 : index
    %34 = vector.load %arg10[%c3_37, %c0_38] : memref<30x32xf32, #tpu.memory_space<vmem>>, vector<24x32xf32>
    %c4_39 = arith.constant 4 : index
    %c0_40 = arith.constant 0 : index
    %35 = vector.load %arg10[%c4_39, %c0_40] : memref<30x32xf32, #tpu.memory_space<vmem>>, vector<24x32xf32>
    %c5_41 = arith.constant 5 : index
    %c0_42 = arith.constant 0 : index
    %36 = vector.load %arg10[%c5_41, %c0_42] : memref<30x32xf32, #tpu.memory_space<vmem>>, vector<24x32xf32>
    %c6_43 = arith.constant 6 : index
    %c0_44 = arith.constant 0 : index
    %37 = vector.load %arg10[%c6_43, %c0_44] : memref<30x32xf32, #tpu.memory_space<vmem>>, vector<24x32xf32>
    %38 = tpu.concatenate %31, %32, %33, %34, %35, %36, %37 in 1 : vector<24x32xf32>, vector<24x32xf32>, vector<24x32xf32>, vector<24x32xf32>, vector<24x32xf32>, vector<24x32xf32>, vector<24x32xf32> -> vector<24x224xf32>
    %39 = arith.truncf %38 : vector<24x224xf32> to vector<24x224xbf16>
    %c0_45 = arith.constant 0 : index
    %c0_46 = arith.constant 0 : index
    %40 = vector.load %arg4[%c0_45, %c0_46] : memref<224x32xbf16, #tpu.memory_space<vmem>>, vector<224x32xbf16>
    %cst_47 = arith.constant dense<0.000000e+00> : vector<24x32xf32>
    %41 = tpu.matmul %39, %40, %cst_47 {dimension_numbers = #tpu.dot_dimension_numbers<[1], [0], [0], [1], [0, 0, 1, 1], [], []>} : vector<24x224xbf16>, vector<224x32xbf16>, vector<24x32xf32> -> vector<24x32xf32>
    %c0_48 = arith.constant 0 : index
    %c0_49 = arith.constant 0 : index
    %42 = vector.load %arg5[%c0_48, %c0_49] : memref<1x32xf32, #tpu.memory_space<vmem>>, vector<1x32xf32>
    %43 = vector.broadcast %42 : vector<1x32xf32> to vector<24x32xf32>
    %44 = arith.addf %41, %43 : vector<24x32xf32>
    %cst_50 = arith.constant 0.000000e+00 : f32
    %45 = vector.broadcast %cst_50 : f32 to vector<24x32xf32>
    %46 = arith.cmpf oge, %44, %45 : vector<24x32xf32>
    %cst_51 = arith.constant 3.000000e-01 : f32
    %47 = vector.broadcast %cst_51 : f32 to vector<24x32xf32>
    %48 = arith.mulf %47, %44 : vector<24x32xf32>
    %49 = arith.select %46, %44, %48 : vector<24x32xi1>, vector<24x32xf32>
    %cst_52 = arith.constant 0.000000e+00 : f32
    %50 = vector.broadcast %cst_52 : f32 to vector<3x32xf32>
    %c0_53 = arith.constant 0 : index
    %c0_54 = arith.constant 0 : index
    %51 = vector.load %arg11[%c0_53, %c0_54] : memref<30x32xf32, #tpu.memory_space<vmem>>, vector<3x32xf32>
    tpu.vector_store %arg11[%c0_53, %c0_54], %50 {strides = array<i32>} : memref<30x32xf32, #tpu.memory_space<vmem>>, vector<3x32xf32>,
    %cst_55 = arith.constant 0.000000e+00 : f32
    %52 = vector.broadcast %cst_55 : f32 to vector<3x32xf32>
    %c27_56 = arith.constant 27 : index
    %c0_57 = arith.constant 0 : index
    %53 = vector.load %arg11[%c27_56, %c0_57] : memref<30x32xf32, #tpu.memory_space<vmem>>, vector<3x32xf32>
    tpu.vector_store %arg11[%c27_56, %c0_57], %52 {strides = array<i32>} : memref<30x32xf32, #tpu.memory_space<vmem>>, vector<3x32xf32>,
    %c3_58 = arith.constant 3 : index
    %c0_59 = arith.constant 0 : index
    %54 = vector.load %arg11[%c3_58, %c0_59] : memref<30x32xf32, #tpu.memory_space<vmem>>, vector<24x32xf32>
    tpu.vector_store %arg11[%c3_58, %c0_59], %49 {strides = array<i32>} : memref<30x32xf32, #tpu.memory_space<vmem>>, vector<24x32xf32>,
    %c0_60 = arith.constant 0 : index
    %c0_61 = arith.constant 0 : index
    %55 = vector.load %arg11[%c0_60, %c0_61] : memref<30x32xf32, #tpu.memory_space<vmem>>, vector<24x32xf32>
    %c1_62 = arith.constant 1 : index
    %c0_63 = arith.constant 0 : index
    %56 = vector.load %arg11[%c1_62, %c0_63] : memref<30x32xf32, #tpu.memory_space<vmem>>, vector<24x32xf32>
    %c2_64 = arith.constant 2 : index
    %c0_65 = arith.constant 0 : index
    %57 = vector.load %arg11[%c2_64, %c0_65] : memref<30x32xf32, #tpu.memory_space<vmem>>, vector<24x32xf32>
    %c3_66 = arith.constant 3 : index
    %c0_67 = arith.constant 0 : index
    %58 = vector.load %arg11[%c3_66, %c0_67] : memref<30x32xf32, #tpu.memory_space<vmem>>, vector<24x32xf32>
    %c4_68 = arith.constant 4 : index
    %c0_69 = arith.constant 0 : index
    %59 = vector.load %arg11[%c4_68, %c0_69] : memref<30x32xf32, #tpu.memory_space<vmem>>, vector<24x32xf32>
    %c5_70 = arith.constant 5 : index
    %c0_71 = arith.constant 0 : index
    %60 = vector.load %arg11[%c5_70, %c0_71] : memref<30x32xf32, #tpu.memory_space<vmem>>, vector<24x32xf32>
    %c6_72 = arith.constant 6 : index
    %c0_73 = arith.constant 0 : index
    %61 = vector.load %arg11[%c6_72, %c0_73] : memref<30x32xf32, #tpu.memory_space<vmem>>, vector<24x32xf32>
    %62 = tpu.concatenate %55, %56, %57, %58, %59, %60, %61 in 1 : vector<24x32xf32>, vector<24x32xf32>, vector<24x32xf32>, vector<24x32xf32>, vector<24x32xf32>, vector<24x32xf32>, vector<24x32xf32> -> vector<24x224xf32>
    %63 = arith.truncf %62 : vector<24x224xf32> to vector<24x224xbf16>
    %c0_74 = arith.constant 0 : index
    %c0_75 = arith.constant 0 : index
    %64 = vector.load %arg6[%c0_74, %c0_75] : memref<224x32xbf16, #tpu.memory_space<vmem>>, vector<224x32xbf16>
    %cst_76 = arith.constant dense<0.000000e+00> : vector<24x32xf32>
    %65 = tpu.matmul %63, %64, %cst_76 {dimension_numbers = #tpu.dot_dimension_numbers<[1], [0], [0], [1], [0, 0, 1, 1], [], []>} : vector<24x224xbf16>, vector<224x32xbf16>, vector<24x32xf32> -> vector<24x32xf32>
    %c0_77 = arith.constant 0 : index
    %c0_78 = arith.constant 0 : index
    %66 = vector.load %arg7[%c0_77, %c0_78] : memref<1x32xf32, #tpu.memory_space<vmem>>, vector<1x32xf32>
    %67 = vector.broadcast %66 : vector<1x32xf32> to vector<24x32xf32>
    %68 = arith.addf %65, %67 : vector<24x32xf32>
    %cst_79 = arith.constant 0.000000e+00 : f32
    %69 = vector.broadcast %cst_79 : f32 to vector<24x32xf32>
    %70 = arith.cmpf oge, %68, %69 : vector<24x32xf32>
    %cst_80 = arith.constant 3.000000e-01 : f32
    %71 = vector.broadcast %cst_80 : f32 to vector<24x32xf32>
    %72 = arith.mulf %71, %68 : vector<24x32xf32>
    %73 = arith.select %70, %68, %72 : vector<24x32xi1>, vector<24x32xf32>
    %c0_81 = arith.constant 0 : index
    %c0_82 = arith.constant 0 : index
    %c0_83 = arith.constant 0 : index
    %74 = vector.load %arg8[%c0_81, %c0_82, %c0_83] : memref<1x24x32xf32, #tpu.memory_space<vmem>>, vector<1x24x32xf32>
    %75 = vector.shape_cast %74 : vector<1x24x32xf32> to vector<24x32xf32>
    %76 = vector.shape_cast %73 : vector<24x32xf32> to vector<1x24x32xf32>
    tpu.vector_store %arg8[%c0_81, %c0_82, %c0_83], %76 {strides = array<i32>} : memref<1x24x32xf32, #tpu.memory_space<vmem>>, vector<1x24x32xf32>,
    return
  }
  func.func @transform_0(%arg0: i32) -> (i32, i32, i32) {
    %c0_i32 = arith.constant 0 : i32
    %c0_i32_0 = arith.constant 0 : i32
    %c0_i32_1 = arith.constant 0 : i32
    return %arg0, %c0_i32, %c0_i32_0 : i32, i32, i32
  }
  func.func @transform_1(%arg0: i32) -> (i32, i32) {
    %c0_i32 = arith.constant 0 : i32
    %c0_i32_0 = arith.constant 0 : i32
    %c0_i32_1 = arith.constant 0 : i32
    return %c0_i32, %c0_i32_0 : i32, i32
  }
  func.func @transform_2(%arg0: i32) -> (i32, i32) {
    %c0_i32 = arith.constant 0 : i32
    %c0_i32_0 = arith.constant 0 : i32
    %c0_i32_1 = arith.constant 0 : i32
    return %c0_i32, %c0_i32_0 : i32, i32
  }
  func.func @transform_3(%arg0: i32) -> (i32, i32) {
    %c0_i32 = arith.constant 0 : i32
    %c0_i32_0 = arith.constant 0 : i32
    %c0_i32_1 = arith.constant 0 : i32
    return %c0_i32, %c0_i32_0 : i32, i32
  }
  func.func @transform_4(%arg0: i32) -> (i32, i32) {
    %c0_i32 = arith.constant 0 : i32
    %c0_i32_0 = arith.constant 0 : i32
    %c0_i32_1 = arith.constant 0 : i32
    return %c0_i32, %c0_i32_0 : i32, i32
  }
  func.func @transform_5(%arg0: i32) -> (i32, i32) {
    %c0_i32 = arith.constant 0 : i32
    %c0_i32_0 = arith.constant 0 : i32
    %c0_i32_1 = arith.constant 0 : i32
    return %c0_i32, %c0_i32_0 : i32, i32
  }
  func.func @transform_6(%arg0: i32) -> (i32, i32) {
    %c0_i32 = arith.constant 0 : i32
    %c0_i32_0 = arith.constant 0 : i32
    %c0_i32_1 = arith.constant 0 : i32
    return %c0_i32, %c0_i32_0 : i32, i32
  }
  func.func @transform_7(%arg0: i32) -> (i32, i32, i32) {
    %c0_i32 = arith.constant 0 : i32
    %c0_i32_0 = arith.constant 0 : i32
    %c0_i32_1 = arith.constant 0 : i32
    return %arg0, %c0_i32, %c0_i32_0 : i32, i32, i32
  }
}

module attributes {stable_mosaic.version = 11 : i64} {
  func.func @kernel(%arg0: i32, %arg1: memref<1x16x8xf32, #tpu.memory_space<vmem>>, %arg2: memref<24x32xbf16, #tpu.memory_space<vmem>>, %arg3: memref<1x32xf32, #tpu.memory_space<vmem>>, %arg4: memref<96x32xbf16, #tpu.memory_space<vmem>>, %arg5: memref<1x32xf32, #tpu.memory_space<vmem>>, %arg6: memref<1x16x32xf32, #tpu.memory_space<vmem>>, %arg7: memref<18x8xf32, #tpu.memory_space<vmem>>, %arg8: memref<18x32xf32, #tpu.memory_space<vmem>>) attributes {dimension_semantics = [#tpu.dimension_semantics<parallel>], iteration_bounds = array<i64: 2>, scalar_prefetch = 0 : i64, scratch_operands = 2 : i64, tpu.core_type = #tpu.core_type<tc>, window_params = [{transform_indices = @transform_0, window_bounds = array<i64: 1, 16, 8>}, {pipeline_mode = #tpu.pipeline_mode<synchronous>, transform_indices = @transform_1, window_bounds = array<i64: 24, 32>}, {pipeline_mode = #tpu.pipeline_mode<synchronous>, transform_indices = @transform_2, window_bounds = array<i64: 1, 32>}, {pipeline_mode = #tpu.pipeline_mode<synchronous>, transform_indices = @transform_3, window_bounds = array<i64: 96, 32>}, {pipeline_mode = #tpu.pipeline_mode<synchronous>, transform_indices = @transform_4, window_bounds = array<i64: 1, 32>}, {transform_indices = @transform_5, window_bounds = array<i64: 1, 16, 32>}]} {
    %c0 = arith.constant 0 : index
    %c0_0 = arith.constant 0 : index
    %c0_1 = arith.constant 0 : index
    %0 = vector.load %arg1[%c0, %c0_0, %c0_1] : memref<1x16x8xf32, #tpu.memory_space<vmem>>, vector<1x16x8xf32>
    %1 = vector.shape_cast %0 : vector<1x16x8xf32> to vector<16x8xf32>
    %cst = arith.constant 0.000000e+00 : f32
    %2 = vector.broadcast %cst : f32 to vector<1x8xf32>
    %c0_2 = arith.constant 0 : index
    %c0_3 = arith.constant 0 : index
    %3 = vector.load %arg7[%c0_2, %c0_3] : memref<18x8xf32, #tpu.memory_space<vmem>>, vector<1x8xf32>
    tpu.vector_store %arg7[%c0_2, %c0_3], %2 {strides = array<i32>} : memref<18x8xf32, #tpu.memory_space<vmem>>, vector<1x8xf32>,
    %cst_4 = arith.constant 0.000000e+00 : f32
    %4 = vector.broadcast %cst_4 : f32 to vector<1x8xf32>
    %c17 = arith.constant 17 : index
    %c0_5 = arith.constant 0 : index
    %5 = vector.load %arg7[%c17, %c0_5] : memref<18x8xf32, #tpu.memory_space<vmem>>, vector<1x8xf32>
    tpu.vector_store %arg7[%c17, %c0_5], %4 {strides = array<i32>} : memref<18x8xf32, #tpu.memory_space<vmem>>, vector<1x8xf32>,
    %c1 = arith.constant 1 : index
    %c0_6 = arith.constant 0 : index
    %6 = vector.load %arg7[%c1, %c0_6] : memref<18x8xf32, #tpu.memory_space<vmem>>, vector<16x8xf32>
    tpu.vector_store %arg7[%c1, %c0_6], %1 {strides = array<i32>} : memref<18x8xf32, #tpu.memory_space<vmem>>, vector<16x8xf32>,
    %c0_7 = arith.constant 0 : index
    %c0_8 = arith.constant 0 : index
    %7 = vector.load %arg7[%c0_7, %c0_8] : memref<18x8xf32, #tpu.memory_space<vmem>>, vector<16x8xf32>
    %c1_9 = arith.constant 1 : index
    %c0_10 = arith.constant 0 : index
    %8 = vector.load %arg7[%c1_9, %c0_10] : memref<18x8xf32, #tpu.memory_space<vmem>>, vector<16x8xf32>
    %c2 = arith.constant 2 : index
    %c0_11 = arith.constant 0 : index
    %9 = vector.load %arg7[%c2, %c0_11] : memref<18x8xf32, #tpu.memory_space<vmem>>, vector<16x8xf32>
    %10 = tpu.concatenate %7, %8, %9 in 1 : vector<16x8xf32>, vector<16x8xf32>, vector<16x8xf32> -> vector<16x24xf32>
    %11 = arith.truncf %10 : vector<16x24xf32> to vector<16x24xbf16>
    %c0_12 = arith.constant 0 : index
    %c0_13 = arith.constant 0 : index
    %12 = vector.load %arg2[%c0_12, %c0_13] : memref<24x32xbf16, #tpu.memory_space<vmem>>, vector<24x32xbf16>
    %cst_14 = arith.constant dense<0.000000e+00> : vector<16x32xf32>
    %13 = tpu.matmul %11, %12, %cst_14 {dimension_numbers = #tpu.dot_dimension_numbers<[1], [0], [0], [1], [0, 0, 1, 1], [], []>} : vector<16x24xbf16>, vector<24x32xbf16>, vector<16x32xf32> -> vector<16x32xf32>
    %c0_15 = arith.constant 0 : index
    %c0_16 = arith.constant 0 : index
    %14 = vector.load %arg3[%c0_15, %c0_16] : memref<1x32xf32, #tpu.memory_space<vmem>>, vector<1x32xf32>
    %15 = vector.broadcast %14 : vector<1x32xf32> to vector<16x32xf32>
    %16 = arith.addf %13, %15 : vector<16x32xf32>
    %cst_17 = arith.constant 0.000000e+00 : f32
    %17 = vector.broadcast %cst_17 : f32 to vector<16x32xf32>
    %18 = arith.cmpf oge, %16, %17 : vector<16x32xf32>
    %cst_18 = arith.constant 3.000000e-01 : f32
    %19 = vector.broadcast %cst_18 : f32 to vector<16x32xf32>
    %20 = arith.mulf %19, %16 : vector<16x32xf32>
    %21 = arith.select %18, %16, %20 : vector<16x32xi1>, vector<16x32xf32>
    %cst_19 = arith.constant 0.000000e+00 : f32
    %22 = vector.broadcast %cst_19 : f32 to vector<1x32xf32>
    %c0_20 = arith.constant 0 : index
    %c0_21 = arith.constant 0 : index
    %23 = vector.load %arg8[%c0_20, %c0_21] : memref<18x32xf32, #tpu.memory_space<vmem>>, vector<1x32xf32>
    tpu.vector_store %arg8[%c0_20, %c0_21], %22 {strides = array<i32>} : memref<18x32xf32, #tpu.memory_space<vmem>>, vector<1x32xf32>,
    %cst_22 = arith.constant 0.000000e+00 : f32
    %24 = vector.broadcast %cst_22 : f32 to vector<1x32xf32>
    %c17_23 = arith.constant 17 : index
    %c0_24 = arith.constant 0 : index
    %25 = vector.load %arg8[%c17_23, %c0_24] : memref<18x32xf32, #tpu.memory_space<vmem>>, vector<1x32xf32>
    tpu.vector_store %arg8[%c17_23, %c0_24], %24 {strides = array<i32>} : memref<18x32xf32, #tpu.memory_space<vmem>>, vector<1x32xf32>,
    %c1_25 = arith.constant 1 : index
    %c0_26 = arith.constant 0 : index
    %26 = vector.load %arg8[%c1_25, %c0_26] : memref<18x32xf32, #tpu.memory_space<vmem>>, vector<16x32xf32>
    tpu.vector_store %arg8[%c1_25, %c0_26], %21 {strides = array<i32>} : memref<18x32xf32, #tpu.memory_space<vmem>>, vector<16x32xf32>,
    %c0_27 = arith.constant 0 : index
    %c0_28 = arith.constant 0 : index
    %27 = vector.load %arg8[%c0_27, %c0_28] : memref<18x32xf32, #tpu.memory_space<vmem>>, vector<16x32xf32>
    %c1_29 = arith.constant 1 : index
    %c0_30 = arith.constant 0 : index
    %28 = vector.load %arg8[%c1_29, %c0_30] : memref<18x32xf32, #tpu.memory_space<vmem>>, vector<16x32xf32>
    %c2_31 = arith.constant 2 : index
    %c0_32 = arith.constant 0 : index
    %29 = vector.load %arg8[%c2_31, %c0_32] : memref<18x32xf32, #tpu.memory_space<vmem>>, vector<16x32xf32>
    %30 = tpu.concatenate %27, %28, %29 in 1 : vector<16x32xf32>, vector<16x32xf32>, vector<16x32xf32> -> vector<16x96xf32>
    %31 = arith.truncf %30 : vector<16x96xf32> to vector<16x96xbf16>
    %c0_33 = arith.constant 0 : index
    %c0_34 = arith.constant 0 : index
    %32 = vector.load %arg4[%c0_33, %c0_34] : memref<96x32xbf16, #tpu.memory_space<vmem>>, vector<96x32xbf16>
    %cst_35 = arith.constant dense<0.000000e+00> : vector<16x32xf32>
    %33 = tpu.matmul %31, %32, %cst_35 {dimension_numbers = #tpu.dot_dimension_numbers<[1], [0], [0], [1], [0, 0, 1, 1], [], []>} : vector<16x96xbf16>, vector<96x32xbf16>, vector<16x32xf32> -> vector<16x32xf32>
    %c0_36 = arith.constant 0 : index
    %c0_37 = arith.constant 0 : index
    %34 = vector.load %arg5[%c0_36, %c0_37] : memref<1x32xf32, #tpu.memory_space<vmem>>, vector<1x32xf32>
    %35 = vector.broadcast %34 : vector<1x32xf32> to vector<16x32xf32>
    %36 = arith.addf %33, %35 : vector<16x32xf32>
    %cst_38 = arith.constant 0.000000e+00 : f32
    %37 = vector.broadcast %cst_38 : f32 to vector<16x32xf32>
    %38 = arith.cmpf oge, %36, %37 : vector<16x32xf32>
    %cst_39 = arith.constant 3.000000e-01 : f32
    %39 = vector.broadcast %cst_39 : f32 to vector<16x32xf32>
    %40 = arith.mulf %39, %36 : vector<16x32xf32>
    %41 = arith.select %38, %36, %40 : vector<16x32xi1>, vector<16x32xf32>
    %c0_40 = arith.constant 0 : index
    %c0_41 = arith.constant 0 : index
    %c0_42 = arith.constant 0 : index
    %42 = vector.load %arg6[%c0_40, %c0_41, %c0_42] : memref<1x16x32xf32, #tpu.memory_space<vmem>>, vector<1x16x32xf32>
    %43 = vector.shape_cast %42 : vector<1x16x32xf32> to vector<16x32xf32>
    %44 = vector.shape_cast %41 : vector<16x32xf32> to vector<1x16x32xf32>
    tpu.vector_store %arg6[%c0_40, %c0_41, %c0_42], %44 {strides = array<i32>} : memref<1x16x32xf32, #tpu.memory_space<vmem>>, vector<1x16x32xf32>,
    return
  }
  func.func @transform_0(%arg0: i32) -> (i32, i32, i32) {
    %c0_i32 = arith.constant 0 : i32
    %c0_i32_0 = arith.constant 0 : i32
    %c0_i32_1 = arith.constant 0 : i32
    return %arg0, %c0_i32, %c0_i32_0 : i32, i32, i32
  }
  func.func @transform_1(%arg0: i32) -> (i32, i32) {
    %c0_i32 = arith.constant 0 : i32
    %c0_i32_0 = arith.constant 0 : i32
    %c0_i32_1 = arith.constant 0 : i32
    return %c0_i32, %c0_i32_0 : i32, i32
  }
  func.func @transform_2(%arg0: i32) -> (i32, i32) {
    %c0_i32 = arith.constant 0 : i32
    %c0_i32_0 = arith.constant 0 : i32
    %c0_i32_1 = arith.constant 0 : i32
    return %c0_i32, %c0_i32_0 : i32, i32
  }
  func.func @transform_3(%arg0: i32) -> (i32, i32) {
    %c0_i32 = arith.constant 0 : i32
    %c0_i32_0 = arith.constant 0 : i32
    %c0_i32_1 = arith.constant 0 : i32
    return %c0_i32, %c0_i32_0 : i32, i32
  }
  func.func @transform_4(%arg0: i32) -> (i32, i32) {
    %c0_i32 = arith.constant 0 : i32
    %c0_i32_0 = arith.constant 0 : i32
    %c0_i32_1 = arith.constant 0 : i32
    return %c0_i32, %c0_i32_0 : i32, i32
  }
  func.func @transform_5(%arg0: i32) -> (i32, i32, i32) {
    %c0_i32 = arith.constant 0 : i32
    %c0_i32_0 = arith.constant 0 : i32
    %c0_i32_1 = arith.constant 0 : i32
    return %arg0, %c0_i32, %c0_i32_0 : i32, i32, i32
  }
}

module attributes {stable_mosaic.version = 11 : i64} {
  func.func @kernel(%arg0: i32, %arg1: i32, %arg2: memref<1x24x32xf32, #tpu.memory_space<vmem>>, %arg3: memref<1x128x32xf32, #tpu.memory_space<vmem>>, %arg4: memref<1x24x128xf32, #tpu.memory_space<vmem>>, %arg5: memref<1x24x128xf32, #tpu.memory_space<vmem>>, %arg6: memref<1x24x128xf32, #tpu.memory_space<vmem>>) attributes {dimension_semantics = [#tpu.dimension_semantics<parallel>, #tpu.dimension_semantics<parallel>], iteration_bounds = array<i64: 2, 1>, scalar_prefetch = 0 : i64, scratch_operands = 0 : i64, tpu.core_type = #tpu.core_type<tc>, window_params = [{transform_indices = @transform_0, window_bounds = array<i64: 1, 24, 32>}, {transform_indices = @transform_1, window_bounds = array<i64: 1, 128, 32>}, {transform_indices = @transform_2, window_bounds = array<i64: 1, 24, 128>}, {transform_indices = @transform_3, window_bounds = array<i64: 1, 24, 128>}, {transform_indices = @transform_4, window_bounds = array<i64: 1, 24, 128>}]} {
    %c0 = arith.constant 0 : index
    %c0_0 = arith.constant 0 : index
    %c0_1 = arith.constant 0 : index
    %0 = vector.load %arg2[%c0, %c0_0, %c0_1] : memref<1x24x32xf32, #tpu.memory_space<vmem>>, vector<1x24x32xf32>
    %1 = vector.shape_cast %0 : vector<1x24x32xf32> to vector<24x32xf32>
    %c0_2 = arith.constant 0 : index
    %c0_3 = arith.constant 0 : index
    %c0_4 = arith.constant 0 : index
    %2 = vector.load %arg3[%c0_2, %c0_3, %c0_4] : memref<1x128x32xf32, #tpu.memory_space<vmem>>, vector<1x128x32xf32>
    %3 = vector.shape_cast %2 : vector<1x128x32xf32> to vector<128x32xf32>
    %4 = arith.mulf %1, %1 : vector<24x32xf32>
    %cst = arith.constant dense<0.000000e+00> : vector<24xf32>
    %5 = vector.multi_reduction <add>, %4, %cst [1] : vector<24x32xf32> to vector<24xf32>
    %6 = vector.shape_cast %5 : vector<24xf32> to vector<24x1xf32>
    %cst_5 = arith.constant 1.000000e+00 : f32
    %7 = vector.broadcast %cst_5 : f32 to vector<1x32xf32>
    %8 = arith.mulf %3, %3 : vector<128x32xf32>
    %cst_6 = arith.constant dense<0.000000e+00> : vector<1x128xf32>
    %9 = tpu.matmul %7, %8, %cst_6 {dimension_numbers = #tpu.dot_dimension_numbers<[1], [1], [0], [0], [0, 0, 1, 0], [], []>} : vector<1x32xf32>, vector<128x32xf32>, vector<1x128xf32> -> vector<1x128xf32>
    %cst_7 = arith.constant dense<0.000000e+00> : vector<24x128xf32>
    %10 = tpu.matmul %1, %3, %cst_7 {dimension_numbers = #tpu.dot_dimension_numbers<[1], [1], [0], [0], [0, 0, 1, 0], [], []>} : vector<24x32xf32>, vector<128x32xf32>, vector<24x128xf32> -> vector<24x128xf32>
    %11 = vector.broadcast %6 : vector<24x1xf32> to vector<24x128xf32>
    %12 = vector.broadcast %9 : vector<1x128xf32> to vector<24x128xf32>
    %13 = arith.addf %11, %12 : vector<24x128xf32>
    %cst_8 = arith.constant 2.000000e+00 : f32
    %14 = vector.broadcast %cst_8 : f32 to vector<24x128xf32>
    %15 = arith.mulf %14, %10 : vector<24x128xf32>
    %16 = arith.subf %13, %15 : vector<24x128xf32>
    %cst_9 = arith.constant -5.000000e-04 : f32
    %17 = vector.broadcast %cst_9 : f32 to vector<24x128xf32>
    %18 = arith.mulf %17, %16 : vector<24x128xf32>
    %19 = tpu.iota {dimensions = array<i32: 1>} : vector<24x128xi32>
    %c16_i32 = arith.constant 16 : i32
    %20 = vector.broadcast %c16_i32 : i32 to vector<24x128xi32>
    %21 = arith.cmpi slt, %19, %20 : vector<24x128xi32>
    %cst_10 = arith.constant 0xFF800000 : f32
    %22 = vector.broadcast %cst_10 : f32 to vector<24x128xf32>
    %23 = arith.select %21, %18, %22 : vector<24x128xi1>, vector<24x128xf32>
    %c0_11 = arith.constant 0 : index
    %c0_12 = arith.constant 0 : index
    %c0_13 = arith.constant 0 : index
    %24 = vector.load %arg4[%c0_11, %c0_12, %c0_13] : memref<1x24x128xf32, #tpu.memory_space<vmem>>, vector<1x24x128xf32>
    %25 = vector.shape_cast %24 : vector<1x24x128xf32> to vector<24x128xf32>
    %cst_14 = arith.constant 9.99999993E-9 : f32
    %26 = vector.broadcast %cst_14 : f32 to vector<24x128xf32>
    %27 = arith.addf %25, %26 : vector<24x128xf32>
    %cst_15 = arith.constant dense<0xFF800000> : vector<24xf32>
    %28 = vector.multi_reduction <maximumf>, %23, %cst_15 [1] : vector<24x128xf32> to vector<24xf32>
    %29 = vector.shape_cast %28 : vector<24xf32> to vector<24x1xf32>
    %30 = vector.broadcast %29 : vector<24x1xf32> to vector<24x128xf32>
    %31 = arith.subf %23, %30 : vector<24x128xf32>
    %32 = math.exp %31 : vector<24x128xf32>
    %cst_16 = arith.constant dense<0.000000e+00> : vector<24xf32>
    %33 = vector.multi_reduction <add>, %32, %cst_16 [1] : vector<24x128xf32> to vector<24xf32>
    %34 = vector.shape_cast %33 : vector<24xf32> to vector<24x1xf32>
    %35 = math.log %34 : vector<24x1xf32>
    %36 = arith.addf %35, %29 : vector<24x1xf32>
    %37 = vector.broadcast %36 : vector<24x1xf32> to vector<24x128xf32>
    %38 = arith.subf %23, %37 : vector<24x128xf32>
    %39 = math.log %27 : vector<24x128xf32>
    %40 = arith.addf %38, %39 : vector<24x128xf32>
    %c0_17 = arith.constant 0 : index
    %c0_18 = arith.constant 0 : index
    %c0_19 = arith.constant 0 : index
    %41 = vector.load %arg5[%c0_17, %c0_18, %c0_19] : memref<1x24x128xf32, #tpu.memory_space<vmem>>, vector<1x24x128xf32>
    %42 = vector.shape_cast %41 : vector<1x24x128xf32> to vector<24x128xf32>
    %43 = vector.shape_cast %40 : vector<24x128xf32> to vector<1x24x128xf32>
    tpu.vector_store %arg5[%c0_17, %c0_18, %c0_19], %43 {strides = array<i32>} : memref<1x24x128xf32, #tpu.memory_space<vmem>>, vector<1x24x128xf32>,
    %44 = arith.mulf %32, %27 : vector<24x128xf32>
    %cst_20 = arith.constant dense<0.000000e+00> : vector<24xf32>
    %45 = vector.multi_reduction <add>, %44, %cst_20 [1] : vector<24x128xf32> to vector<24xf32>
    %46 = vector.shape_cast %45 : vector<24xf32> to vector<24x1xf32>
    %47 = tpu.reciprocal %46 {approx = true} : vector<24x1xf32> -> vector<24x1xf32>
    %48 = vector.broadcast %47 : vector<24x1xf32> to vector<24x128xf32>
    %49 = arith.mulf %44, %48 : vector<24x128xf32>
    %c0_21 = arith.constant 0 : index
    %c0_22 = arith.constant 0 : index
    %c0_23 = arith.constant 0 : index
    %50 = vector.load %arg6[%c0_21, %c0_22, %c0_23] : memref<1x24x128xf32, #tpu.memory_space<vmem>>, vector<1x24x128xf32>
    %51 = vector.shape_cast %50 : vector<1x24x128xf32> to vector<24x128xf32>
    %52 = vector.shape_cast %49 : vector<24x128xf32> to vector<1x24x128xf32>
    tpu.vector_store %arg6[%c0_21, %c0_22, %c0_23], %52 {strides = array<i32>} : memref<1x24x128xf32, #tpu.memory_space<vmem>>, vector<1x24x128xf32>,
    return
  }
  func.func @transform_0(%arg0: i32, %arg1: i32) -> (i32, i32, i32) {
    %c0_i32 = arith.constant 0 : i32
    %c0_i32_0 = arith.constant 0 : i32
    return %arg0, %arg1, %c0_i32 : i32, i32, i32
  }
  func.func @transform_1(%arg0: i32, %arg1: i32) -> (i32, i32, i32) {
    %c0_i32 = arith.constant 0 : i32
    %c0_i32_0 = arith.constant 0 : i32
    %c0_i32_1 = arith.constant 0 : i32
    return %arg0, %c0_i32, %c0_i32_0 : i32, i32, i32
  }
  func.func @transform_2(%arg0: i32, %arg1: i32) -> (i32, i32, i32) {
    %c0_i32 = arith.constant 0 : i32
    %c0_i32_0 = arith.constant 0 : i32
    return %arg0, %arg1, %c0_i32 : i32, i32, i32
  }
  func.func @transform_3(%arg0: i32, %arg1: i32) -> (i32, i32, i32) {
    %c0_i32 = arith.constant 0 : i32
    %c0_i32_0 = arith.constant 0 : i32
    return %arg0, %arg1, %c0_i32 : i32, i32, i32
  }
  func.func @transform_4(%arg0: i32, %arg1: i32) -> (i32, i32, i32) {
    %c0_i32 = arith.constant 0 : i32
    %c0_i32_0 = arith.constant 0 : i32
    return %arg0, %arg1, %c0_i32 : i32, i32, i32
  }
}

</mosaic_0001>

<bundles_post_ra>
// kernel: aligner_device.3
= control target key start
LH: loop header
LB: loop body
LE: loop exit
PB: predicated region body
PF: predicated region fallthrough
CT: control target
= control target key end

     0   :  { %s601_s18 = smov 0   ;;  %s665_s0 = inlined_call_operand.vmem [shape: f32[2,16,8], index: 0, kind: input, shape index: {}]   ;;  %s666_s1 = inlined_call_operand.vmem [shape: bf16[24,32], index: 1, kind: input, shape index: {}]   ;;  %s667_s2 = inlined_call_operand.vmem [shape: f32[1,32], index: 2, kind: input, shape index: {}]   ;;  %s668_s3 = inlined_call_operand.vmem [shape: bf16[96,32], index: 3, kind: input, shape index: {}]   ;;  %s669_s4 = inlined_call_operand.vmem [shape: f32[1,32], index: 4, kind: input, shape index: {}]   ;;  %s670_s5 = inlined_call_operand.vmem [shape: f32[2,16,32], index: 5, kind: output, shape index: {}]  }
   0x1 LB: > { %s473_s19 = sadd.s32 4294967295, %s564_s18   ;;  %p477_p0 = scmp.ge.s32.totalorder %s564_s18, 1  ;;  %s564_s18 = sphi %s601_s18, %s15_s18  }
   0x2   : > { %p187_p1 = scmp.lt.s32.totalorder %s564_s18, 3 }
   0x4   : > { %p188_p2 = pnand %p477_p0, %p187_p1 }
   0x5   : > { %p215_p3 = scmp.lt.s32.totalorder (!%p188_p2), %s473_s19, 1  ;;  %s567_s24 = smov (!%p188_p2), 8  }
   0x6   : > { %191 = sbr.rel (%p188_p2) target bundleno = 571 (0x23b), region = 40  ;;  %s568_s25 = smov (!%p188_p2), 16  }
   0x7   : > { %s569_s13 = smov (!%p188_p2), 32   ;;  %s570_s14 = smov (!%p188_p2), 64  }
   0xb   : > { %vm228_vm0 = vcmask 57344   ;;  %v566_v0 = vmov 0.0   ;;  %s672_s19 = smov (!%p215_p3, %s473_s19), 1  ;;  %vm231_vm1 = vcmask 64512   ;;  %v264_v9 = vld [vmem:[%s666_s1 + $0x8] sm:$0xf] }
   0xc   : > { %229 = vst.msk [vmem:[#allocation2] sm:$0x1] %vm228_vm0, %v566_v0  ;;  %s514_s20 = sshll.u32 %s672_s19, 4  ;;  %v274_v10 = vunpack.c.l.b16 %v264_v9  ;;  %vm282_vm2 = vcmask 1043456   ;;  %v516_v13 = vld [vmem:[%s666_s1] sm:$0xff]  ;;  %vm258_vm3 = vcmask 130048  }
   0xd   : > { %230 = vst.msk [vmem:[#allocation2 + $0x11] sm:$0x1] %vm228_vm0, %v566_v0  ;;  %s219_s23 = scalar_lea.vmem %s665_s0, %s514_s20  ;;  %vm278_vm4 = vcmask 195584   ;;  %vm306_vm5 = vcmask 253952   ;;  %v556_v27 = vld [vmem:[%s667_s2] ss:$0 sm:$0xff]  ;;  %s224_s28 = scalar_lea.vmem %s670_s5, %s514_s20 }
   0xe   : > { %v226_v1 = vld [vmem:[%s219_s23] sm:$0xff]  ;;  %v227_v2 = vld [vmem:[%s219_s23 + $0x8] sm:$0xff]  ;;  %v276_v11 = vpack.c.b16 %v274_v10, %v274_v10  ;;  %307 = vst.msk [vmem:[#allocation3] sm:$0x1] %vm306_vm5, %v566_v0  ;;  %vm309_vm7 = vcmask 261120   ;;  %v520_v34 = vld [vmem:[%s668_s3 + $0x18] sm:$0xff] }
   0xf   : > { %232 = vst.msk [vmem:[#allocation2 + $0x1] sm:$0xff] %vm231_vm1, %v226_v1  ;;  %v522_v29 = vld [vmem:[%s668_s3 + $0x28] sm:$0xff]  ;;  %v521_v31 = vld [vmem:[%s668_s3 + $0x20] sm:$0xff]  ;;  %v519_v45 = vld [vmem:[%s668_s3 + $0x10] sm:$0xff]  ;;  %vm336_vm9 = vcmask 523264   ;;  %vm392_vm10 = vcmask 785408  }
  0x10   : > { %233 = vst.msk [vmem:[#allocation2 + $0x9] sm:$0xff] %vm231_vm1, %v227_v2  ;;  %v284_v12 = vsel %vm282_vm2, %v276_v11, 0  ;;  %398 = vmatpush.bf16.msra.mxu1 %v522_v29  ;;  %v518_v46 = vld [vmem:[%s668_s3 + $0x8] sm:$0xff]  ;;  %v517_v47 = vld [vmem:[%s668_s3] sm:$0xff] }
  0x11   : > { %292 = vmatpush.bf16.msra.mxu0 %v284_v12  ;;  %308 = vst.msk [vmem:[#allocation3 + $0x11] sm:$0x1] %vm306_vm5, %v566_v0  ;;  %v557_v61 = vld [vmem:[%s669_s4] ss:$0 sm:$0xff] }
  0x14   : > { %399 = vmatpush.bf16.msra.mxu1 %v521_v31 }
  0x15   : > { %293 = vmatpush.bf16.msra.mxu0 %v516_v13 }
  0x16   : > { %v236_v3 = vld [vmem:[#allocation2 + $0x1] sm:$0xff] }
  0x17   : > { %v237_v4 = vld [vmem:[#allocation2 + $0x9] sm:$0xff]  ;;  %v234_v17 = vld [vmem:[#allocation2] sm:$0xff] }
  0x18   : > { %v536_v5 = vpack.i.bf16 %v237_v4, %v236_v3  ;;  %v238_v6 = vld [vmem:[#allocation2 + $0x2] sm:$0xff]  ;;  %v239_v7 = vld [vmem:[#allocation2 + $0xa] sm:$0xff]  ;;  %400 = vmatpush.bf16.msra.mxu1 %v520_v34 }
  0x19   : > { %v541_v8 = vpack.i.bf16 %v239_v7, %v238_v6  ;;  %v235_v18 = vld [vmem:[#allocation2 + $0x8] sm:$0xff] }
  0x1a   : > { %537 = vrot.lane.b32.xlu0 %v536_v5, %s567_s24 }
  0x1c   : > { %401 = vmatpush.bf16.msra.mxu1 %v519_v45 }
  0x20   : > { %402 = vmatpush.bf16.msra.mxu1 %v518_v46 }
  0x22   : > { %542 = vrot.lane.b32.xlu0 %v541_v8, %s568_s25 }
  0x24   : > { %403 = vmatpush.bf16.msra.mxu1 %v517_v47 }
  0x8c   : > { %v538_v14 = vpop.permute.xlu0 %537 }
  0x8d   : > { %v540_v15 = vunpack.i.h.bf16 %v538_v14  ;;  %v539_v16 = vunpack.i.l.bf16 %v538_v14 }
  0x8f   : > { %v256_v22 = vsel %vm231_vm1, %v234_v17, %v539_v16  ;;  %v257_v23 = vsel %vm231_vm1, %v235_v18, %v540_v15 }
  0x94   : > { %v543_v19 = vpop.permute.xlu0 %542 }
  0x95   : > { %v545_v20 = vunpack.i.h.bf16 %v543_v19  ;;  %v544_v21 = vunpack.i.l.bf16 %v543_v19 }
  0x97   : > { %v259_v24 = vsel %vm258_vm3, %v256_v22, %v544_v21  ;;  %v260_v25 = vsel %vm258_vm3, %v257_v23, %v545_v20 }
  0x98   : > { %v261_v26 = vpack.c.bf16 %v260_v25, %v259_v24 }
  0x9a   : > { %486 = vmatmul.msk.bf16.vlgmr.msra.gmra.mxu0 %vm278_vm4, %v261_v26 }
 0x117   : > { %v295_v28 = vpop.f32.mrf.mxu0 }
 0x118   : > { %v296_v30 = vadd.f32 %v556_v27, %v295_v28 }
 0x11a   : > { %vm300_vm6 = vcmp.ge.f32.partialorder %v296_v30, 0.0  ;;  %v302_v32 = vmul.f32 0.3, %v296_v30 }
 0x11c   : > { %v304_v33 = vsel %vm300_vm6, %v296_v30, %v302_v32 }
 0x11d   : > { %310 = vst.msk [vmem:[#allocation3 + $0x1] sm:$0xff] %vm309_vm7, %v304_v33 }
 0x11f   : > { %v297_v35 = vpop.f32.mrf.mxu0 }
 0x120   : > { %v298_v36 = vadd.f32 %v556_v27, %v297_v35 }
 0x122   : > { %vm301_vm8 = vcmp.ge.f32.partialorder %v298_v36, 0.0  ;;  %v303_v37 = vmul.f32 0.3, %v298_v36 }
 0x124   : > { %v305_v38 = vsel %vm301_vm8, %v298_v36, %v303_v37  ;;  %v314_v39 = vld [vmem:[#allocation3 + $0x1] sm:$0xff] }
 0x125   : > { %311 = vst.msk [vmem:[#allocation3 + $0x9] sm:$0xff] %vm309_vm7, %v305_v38  ;;  %v312_v52 = vld [vmem:[#allocation3] sm:$0xff] }
 0x12c   : > { %v315_v40 = vld [vmem:[#allocation3 + $0x9] sm:$0xff] }
 0x12d   : > { %v546_v41 = vpack.i.bf16 %v315_v40, %v314_v39  ;;  %v316_v42 = vld [vmem:[#allocation3 + $0x2] sm:$0xff]  ;;  %v317_v43 = vld [vmem:[#allocation3 + $0xa] sm:$0xff] }
 0x12e   : > { %v551_v44 = vpack.i.bf16 %v317_v43, %v316_v42  ;;  %v313_v53 = vld [vmem:[#allocation3 + $0x8] sm:$0xff] }
 0x12f   : > { %547 = vrot.lane.b32.xlu1 %v546_v41, %s569_s13 }
 0x137   : > { %552 = vrot.lane.b32.xlu1 %v551_v44, %s570_s14 }
 0x1a1   : > { %v548_v48 = vpop.permute.xlu1 %547 }
 0x1a2   : > { %v550_v49 = vunpack.i.h.bf16 %v548_v48  ;;  %v549_v50 = vunpack.i.l.bf16 %v548_v48 }
 0x1a4   : > { %v334_v56 = vsel %vm309_vm7, %v312_v52, %v549_v50  ;;  %v335_v57 = vsel %vm309_vm7, %v313_v53, %v550_v49 }
 0x1a9   : > { %v553_v51 = vpop.permute.xlu1 %552 }
 0x1aa   : > { %v555_v54 = vunpack.i.h.bf16 %v553_v51  ;;  %v554_v55 = vunpack.i.l.bf16 %v553_v51 }
 0x1ac   : > { %v337_v58 = vsel %vm336_vm9, %v334_v56, %v554_v55  ;;  %v338_v59 = vsel %vm336_vm9, %v335_v57, %v555_v54 }
 0x1ad   : > { %v339_v60 = vpack.c.bf16 %v338_v59, %v337_v58 }
 0x1af   : > { %511 = vmatmul.msk.bf16.vlgmr.msra.gmra.mxu1 %vm392_vm10, %v339_v60 }
 0x22c   : > { %v405_v62 = vpop.f32.mrf.mxu1 }
 0x22d   : > { %v406_v63 = vadd.f32 %v557_v61, %v405_v62 }
 0x22f   : > { %vm410_vm11 = vcmp.ge.f32.partialorder %v406_v63, 0.0  ;;  %v412_v0 = vmul.f32 0.3, %v406_v63 }
 0x231   : > { %v414_v1 = vsel %vm410_vm11, %v406_v63, %v412_v0 }
 0x232   : > { %416 = vst.msk [vmem:[%s224_s28] sm:$0xff] %vm309_vm7, %v414_v1 }
 0x234   : > { %v407_v2 = vpop.f32.mrf.mxu1 }
 0x235   : > { %v408_v3 = vadd.f32 %v557_v61, %v407_v2 }
 0x237   : > { %vm411_vm12 = vcmp.ge.f32.partialorder %v408_v3, 0.0  ;;  %v413_v4 = vmul.f32 0.3, %v408_v3 }
 0x239   : > { %v415_v5 = vsel %vm411_vm12, %v408_v3, %v413_v4 }
 0x23a   : > { %417 = vst.msk [vmem:[%s224_s28 + $0x8] sm:$0xff] %vm309_vm7, %v415_v5 }
 0x23b PF: > { %s15_s18 = sadd.s32 1, %s564_s18  }
 0x23c   : > { %p12_p4 = scmp.ge.s32.totalorder %s15_s18, 4  }
 0x23e   :  { %14 = sbr.rel (!%p12_p4) target bundleno = 1 (0x1), region = 70 }

// kernel: aligner_device.5
= control target key start
LH: loop header
LB: loop body
LE: loop exit
PB: predicated region body
PF: predicated region fallthrough
CT: control target
= control target key end

     0   :  { %s956_s15 = smov 0   ;;  %s958_s16 = smov 0   ;;  %s1116_s0 = inlined_call_operand.vmem [shape: f32[2,24,32], index: 0, kind: input, shape index: {}]   ;;  %s1117_s1 = inlined_call_operand.vmem [shape: f32[2,128,32], index: 1, kind: input, shape index: {}]   ;;  %s1118_s2 = inlined_call_operand.vmem [shape: f32[2,24,128], index: 2, kind: input, shape index: {}]   ;;  %s1119_s3 = inlined_call_operand.vmem [shape: f32[2,24,128], index: 3, kind: output, shape index: {0}]   ;;  %s1120_s4 = inlined_call_operand.vmem [shape: f32[2,24,128], index: 4, kind: output, shape index: {1}]  }
   0x1   :  { %s960_s17 = smov 0  }
   0x2 LB: > { %s27_s18 = sadd.s32 1, %s924_s16  ;;  %p778_p0 = scmp.ge.s32.totalorder %s928_s17, 1  ;;  %s928_s17 = sphi %s960_s17, %s15_s17   ;;  %s924_s16 = sphi %s958_s16, %s1122_s16   ;;  %s920_s15 = sphi %s956_s15, %s1121_s15  }
   0x3   : > { %p29_p1 = scmp.ge.s32.totalorder %s27_s18, 2  ;;  %p215_p2 = scmp.lt.s32.totalorder %s928_s17, 3 }
   0x5   : > { %s1124_s18 = smov (%p29_p1, %s27_s18), 0  ;;  %p216_p3 = pnand %p778_p0, %p215_p2 }
   0x6   : > { %p273_p4 = scmp.lt.s32.totalorder (!%p216_p3), %s920_s15, 1 }
   0x7   : > { %219 = sbr.rel (%p216_p3) target bundleno = 487 (0x1e7), region = 32 }
   0xc   : > { %s1126_s15 = smov (!%p273_p4, %s920_s15), 1  ;;  %vm339_vm0 = vcmask 261120   ;;  %v930_v41 = vmov 1.0   ;;  %v532_v43 = vlaneseq }
   0xd   : > { %s823_s19 = sshll.u32 %s1126_s15, 7  ;;  %s1018_s23 = smul.u32 24, %s1126_s15 }
   0xe   : > { %s980_s22 = scalar_lea.vmem %s1117_s1, %s823_s19  ;;  %v533_v49 = vand.u32 127, %v532_v43 }
   0xf   : > { %v335_v0 = vld [vmem:[%s980_s22 + $0x78] sm:$0xff]  ;;  %v334_v1 = vld [vmem:[%s980_s22 + $0x70] sm:$0xff]  ;;  %v333_v4 = vld [vmem:[%s980_s22 + $0x68] sm:$0xff]  ;;  %s280_s26 = scalar_lea.vmem %s1116_s0, %s1018_s23  ;;  %s295_s29 = scalar_lea.vmem %s1118_s2, %s1018_s23 }
  0x10   : > { %824 = vmatpush.xpose.msk.msra.mxu2 %vm339_vm0, %v335_v0  ;;  %825 = vmatpush.xpose.msk.msra.mxu3 %vm339_vm0, %v335_v0  ;;  %v364_v2 = vmul.f32 %v335_v0, %v335_v0  ;;  %v363_v3 = vmul.f32 %v334_v1, %v334_v1  ;;  %v362_v5 = vmul.f32 %v333_v4, %v333_v4  ;;  %v332_v6 = vld [vmem:[%s980_s22 + $0x60] sm:$0xff]  ;;  %v331_v8 = vld [vmem:[%s980_s22 + $0x58] sm:$0xff]  ;;  %v330_v10 = vld [vmem:[%s980_s22 + $0x50] sm:$0xff]  ;;  %vm534_vm1 = vcmp.lt.s32.totalorder %v533_v49, 16  ;;  %s305_s6 = scalar_lea.vmem %s1119_s3, %s1018_s23  ;;  %s315_s9 = scalar_lea.vmem %s1120_s4, %s1018_s23 }
  0x11   : > { %802 = vmatpush.xpose.msk.msra.mxu1 %vm339_vm0, %v335_v0  ;;  %v361_v7 = vmul.f32 %v332_v6, %v332_v6  ;;  %v360_v9 = vmul.f32 %v331_v8, %v331_v8  ;;  %v359_v11 = vmul.f32 %v330_v10, %v330_v10  ;;  %v329_v12 = vld [vmem:[%s980_s22 + $0x48] sm:$0xff]  ;;  %v328_v14 = vld [vmem:[%s980_s22 + $0x40] sm:$0xff]  ;;  %v327_v16 = vld [vmem:[%s980_s22 + $0x38] sm:$0xff] }
  0x12   : > { %785 = vmatpush.xpose.msk.msra.mxu0 %vm339_vm0, %v364_v2  ;;  %v358_v13 = vmul.f32 %v329_v12, %v329_v12  ;;  %v357_v15 = vmul.f32 %v328_v14, %v328_v14  ;;  %v356_v17 = vmul.f32 %v327_v16, %v327_v16  ;;  %v326_v18 = vld [vmem:[%s980_s22 + $0x30] sm:$0xff]  ;;  %v317_v20 = vld [vmem:[%s280_s26] sm:$0xff]  ;;  %v325_v24 = vld [vmem:[%s980_s22 + $0x28] sm:$0xff] }
  0x13   : > { %v319_v19 = vld [vmem:[%s280_s26 + $0x10] sm:$0xff]  ;;  %v355_v22 = vmul.f32 %v326_v18, %v326_v18  ;;  %v336_v23 = vmul.f32 %v317_v20, %v317_v20  ;;  %v318_v27 = vld [vmem:[%s280_s26 + $0x8] sm:$0xff]  ;;  %v354_v28 = vmul.f32 %v325_v24, %v325_v24  ;;  %v324_v30 = vld [vmem:[%s980_s22 + $0x20] sm:$0xff] }
  0x14   : > { %826 = vmatpush.xpose.msk.msra.mxu2 %vm339_vm0, %v334_v1  ;;  %827 = vmatpush.xpose.msk.msra.mxu3 %vm339_vm0, %v334_v1  ;;  %v338_v21 = vmul.f32 %v319_v19, %v319_v19  ;;  %v337_v29 = vmul.f32 %v318_v27, %v318_v27  ;;  %v353_v31 = vmul.f32 %v324_v30, %v324_v30  ;;  %v323_v33 = vld [vmem:[%s980_s22 + $0x18] sm:$0xff]  ;;  %v322_v35 = vld [vmem:[%s980_s22 + $0x10] sm:$0xff]  ;;  %v321_v37 = vld [vmem:[%s980_s22 + $0x8] sm:$0xff] }
  0x15   : > { %803 = vmatpush.xpose.msk.msra.mxu1 %vm339_vm0, %v334_v1  ;;  %v340_v26 = vsel %vm339_vm0, %v336_v23, 0.0  ;;  %v352_v34 = vmul.f32 %v323_v33, %v323_v33  ;;  %v351_v36 = vmul.f32 %v322_v35, %v322_v35  ;;  %v350_v38 = vmul.f32 %v321_v37, %v321_v37  ;;  %v320_v39 = vld [vmem:[%s980_s22] sm:$0xff] }
  0x16   : > { %786 = vmatpush.xpose.msk.msra.mxu0 %vm339_vm0, %v363_v3  ;;  %v346_v25 = vsel %vm339_vm0, %v338_v21, 0.0  ;;  %341 = vadd.xlane.f32.xlu0 %v340_v26  ;;  %v343_v32 = vsel %vm339_vm0, %v337_v29, 0.0  ;;  %v349_v40 = vmul.f32 %v320_v39, %v320_v39  ;;  %v540_v21 = vld [vmem:[%s295_s29 + $0x10] sm:$0xff] }
  0x17   : > { %347 = vadd.xlane.f32.xlu1 %v346_v25 }
  0x18   : > { %828 = vmatpush.xpose.msk.msra.mxu2 %vm339_vm0, %v333_v4  ;;  %829 = vmatpush.xpose.msk.msra.mxu3 %vm339_vm0, %v333_v4 }
  0x19   : > { %804 = vmatpush.xpose.msk.msra.mxu1 %vm339_vm0, %v333_v4 }
  0x1a   : > { %787 = vmatpush.xpose.msk.msra.mxu0 %vm339_vm0, %v362_v5 }
  0x1c   : > { %830 = vmatpush.xpose.msk.msra.mxu2 %vm339_vm0, %v332_v6  ;;  %831 = vmatpush.xpose.msk.msra.mxu3 %vm339_vm0, %v332_v6 }
  0x1d   : > { %805 = vmatpush.xpose.msk.msra.mxu1 %vm339_vm0, %v332_v6 }
  0x1e   : > { %788 = vmatpush.xpose.msk.msra.mxu0 %vm339_vm0, %v361_v7  ;;  %344 = vadd.xlane.f32.xlu0 %v343_v32 }
  0x20   : > { %832 = vmatpush.xpose.msk.msra.mxu2 %vm339_vm0, %v331_v8  ;;  %833 = vmatpush.xpose.msk.msra.mxu3 %vm339_vm0, %v331_v8 }
  0x21   : > { %806 = vmatpush.xpose.msk.msra.mxu1 %vm339_vm0, %v331_v8 }
  0x22   : > { %789 = vmatpush.xpose.msk.msra.mxu0 %vm339_vm0, %v360_v9 }
  0x24   : > { %834 = vmatpush.xpose.msk.msra.mxu2 %vm339_vm0, %v330_v10  ;;  %835 = vmatpush.xpose.msk.msra.mxu3 %vm339_vm0, %v330_v10 }
  0x25   : > { %807 = vmatpush.xpose.msk.msra.mxu1 %vm339_vm0, %v330_v10 }
  0x26   : > { %790 = vmatpush.xpose.msk.msra.mxu0 %vm339_vm0, %v359_v11 }
  0x28   : > { %836 = vmatpush.xpose.msk.msra.mxu2 %vm339_vm0, %v329_v12  ;;  %837 = vmatpush.xpose.msk.msra.mxu3 %vm339_vm0, %v329_v12 }
  0x29   : > { %808 = vmatpush.xpose.msk.msra.mxu1 %vm339_vm0, %v329_v12  ;;  %v538_v12 = vld [vmem:[%s295_s29] sm:$0xff] }
  0x2a   : > { %791 = vmatpush.xpose.msk.msra.mxu0 %vm339_vm0, %v358_v13 }
  0x2c   : > { %838 = vmatpush.xpose.msk.msra.mxu2 %vm339_vm0, %v328_v14  ;;  %839 = vmatpush.xpose.msk.msra.mxu3 %vm339_vm0, %v328_v14 }
  0x2d   : > { %809 = vmatpush.xpose.msk.msra.mxu1 %vm339_vm0, %v328_v14 }
  0x2e   : > { %792 = vmatpush.xpose.msk.msra.mxu0 %vm339_vm0, %v357_v15  ;;  %v539_v15 = vld [vmem:[%s295_s29 + $0x8] sm:$0xff] }
  0x30   : > { %840 = vmatpush.xpose.msk.msra.mxu2 %vm339_vm0, %v327_v16  ;;  %841 = vmatpush.xpose.msk.msra.mxu3 %vm339_vm0, %v327_v16 }
  0x31   : > { %810 = vmatpush.xpose.msk.msra.mxu1 %vm339_vm0, %v327_v16  ;;  %v541_v16 = vadd.f32 1e-08, %v538_v12 }
  0x32   : > { %793 = vmatpush.xpose.msk.msra.mxu0 %vm339_vm0, %v356_v17  ;;  %v542_v17 = vadd.f32 1e-08, %v539_v15 }
  0x34   : > { %842 = vmatpush.xpose.msk.msra.mxu2 %vm339_vm0, %v326_v18  ;;  %843 = vmatpush.xpose.msk.msra.mxu3 %vm339_vm0, %v326_v18 }
  0x35   : > { %811 = vmatpush.xpose.msk.msra.mxu1 %vm339_vm0, %v326_v18 }
  0x36   : > { %794 = vmatpush.xpose.msk.msra.mxu0 %vm339_vm0, %v355_v22  ;;  %v543_v22 = vadd.f32 1e-08, %v540_v21 }
  0x38   : > { %844 = vmatpush.xpose.msk.msra.mxu2 %vm339_vm0, %v325_v24  ;;  %845 = vmatpush.xpose.msk.msra.mxu3 %vm339_vm0, %v325_v24 }
  0x39   : > { %812 = vmatpush.xpose.msk.msra.mxu1 %vm339_vm0, %v325_v24 }
  0x3a   : > { %795 = vmatpush.xpose.msk.msra.mxu0 %vm339_vm0, %v354_v28 }
  0x3c   : > { %846 = vmatpush.xpose.msk.msra.mxu2 %vm339_vm0, %v324_v30  ;;  %847 = vmatpush.xpose.msk.msra.mxu3 %vm339_vm0, %v324_v30 }
  0x3d   : > { %813 = vmatpush.xpose.msk.msra.mxu1 %vm339_vm0, %v324_v30 }
  0x3e   : > { %796 = vmatpush.xpose.msk.msra.mxu0 %vm339_vm0, %v353_v31 }
  0x40   : > { %848 = vmatpush.xpose.msk.msra.mxu2 %vm339_vm0, %v323_v33  ;;  %849 = vmatpush.xpose.msk.msra.mxu3 %vm339_vm0, %v323_v33 }
  0x41   : > { %814 = vmatpush.xpose.msk.msra.mxu1 %vm339_vm0, %v323_v33 }
  0x42   : > { %797 = vmatpush.xpose.msk.msra.mxu0 %vm339_vm0, %v352_v34 }
  0x44   : > { %850 = vmatpush.xpose.msk.msra.mxu2 %vm339_vm0, %v322_v35  ;;  %851 = vmatpush.xpose.msk.msra.mxu3 %vm339_vm0, %v322_v35 }
  0x45   : > { %815 = vmatpush.xpose.msk.msra.mxu1 %vm339_vm0, %v322_v35 }
  0x46   : > { %798 = vmatpush.xpose.msk.msra.mxu0 %vm339_vm0, %v351_v36 }
  0x48   : > { %852 = vmatpush.xpose.msk.msra.mxu2 %vm339_vm0, %v321_v37  ;;  %853 = vmatpush.xpose.msk.msra.mxu3 %vm339_vm0, %v321_v37 }
  0x49   : > { %816 = vmatpush.xpose.msk.msra.mxu1 %vm339_vm0, %v321_v37 }
  0x4a   : > { %799 = vmatpush.xpose.msk.msra.mxu0 %vm339_vm0, %v350_v38 }
  0x4c   : > { %854 = vmatpush.xpose.msk.msra.mxu2 %vm339_vm0, %v320_v39  ;;  %855 = vmatpush.xpose.msk.msra.mxu3 %vm339_vm0, %v320_v39 }
  0x4d   : > { %817 = vmatpush.xpose.msk.msra.mxu1 %vm339_vm0, %v320_v39 }
  0x4e   : > { %800 = vmatpush.xpose.msk.msra.mxu0 %vm339_vm0, %v349_v40 }
  0x4f   : > { %819 = vmatmul.msk.f32.vlgmr.msra.gmra.mxu2 %vm339_vm0, %v318_v27  ;;  %820 = vmatmul.msk.f32.vlgmr.msra.gmra.mxu3 %vm339_vm0, %v319_v19 }
  0x50   : > { %818 = vmatmul.msk.f32.vlgmr.msra.gmra.mxu1 %vm339_vm0, %v317_v20 }
  0x51   : > { %801 = vmatmul.msk.f32.vlgmr.msra.gmra.mxu0 %vm339_vm0, %v930_v41 }
  0x89   : > { %v342_v42 = vpop.xlane.xlu0 %341 }
  0x8a   : > { %v348_v51 = vpop.xlane.xlu1 %347 }
  0x91   : > { %v345_v46 = vpop.xlane.xlu0 %344 }
  0xcd   : > { %v510_v44 = vpop.f32.mrf.mxu1 }
  0xce   : > { %v433_v45 = vpop.f32.mrf.mxu0  ;;  %v523_v48 = vmul.f32 2.0, %v510_v44 }
  0xcf   : > { %v519_v47 = vperm.slane %v433_v45, 0 }
  0xd1   : > { %v520_v50 = vadd.f32 %v519_v47, %v342_v42  ;;  %v521_v52 = vadd.f32 %v519_v47, %v345_v46  ;;  %v522_v59 = vadd.f32 %v519_v47, %v348_v51 }
  0xd2   : > { %v516_v53 = vpop.f32.mrf.mxu3  ;;  %v513_v54 = vpop.f32.mrf.mxu2 }
  0xd3   : > { %v526_v55 = vsub.f32 %v520_v50, %v523_v48  ;;  %v524_v56 = vmul.f32 2.0, %v513_v54  ;;  %v525_v58 = vmul.f32 2.0, %v516_v53 }
  0xd5   : > { %v529_v57 = vmul.f32 -0.0005, %v526_v55  ;;  %v527_v60 = vsub.f32 %v521_v52, %v524_v56  ;;  %v528_v63 = vsub.f32 %v522_v59, %v525_v58 }
  0xd7   : > { %v530_v61 = vmul.f32 -0.0005, %v527_v60  ;;  %v1076_v62 = vsel %vm534_vm1, %v529_v57, -inf  ;;  %v531_v1 = vmul.f32 -0.0005, %v528_v63 }
  0xd8   : > { %544 = vmax.xlane.f32.xlu1 %v1076_v62 }
  0xd9   : > { %v1079_v0 = vsel %vm534_vm1, %v530_v61, -inf  ;;  %v1082_v2 = vsel %vm534_vm1, %v531_v1, -inf }
  0xda   : > { %546 = vmax.xlane.f32.xlu2 %v1079_v0 }
  0xe2   : > { %548 = vmax.xlane.f32.xlu2 %v1082_v2 }
 0x14b   : > { %v545_v3 = vpop.xlane.xlu1 %544 }
 0x14c   : > { %v550_v4 = vsub.f32 %v1076_v62, %v545_v3 }
 0x14d   : > { %v547_v5 = vpop.xlane.xlu2 %546 }
 0x14e   : > { %v553_v6 = vmul.f32 1.442695, %v550_v4  ;;  %v551_v7 = vsub.f32 %v1079_v0, %v547_v5 }
 0x150   : > { %882 = vpow2.f32 %v553_v6  ;;  %v555_v8 = vmul.f32 1.442695, %v551_v7 }
 0x152   : > { %884 = vpow2.f32 %v555_v8 }
 0x155   : > { %v1091_v9 = vpop.xlane.xlu2 %548 }
 0x156   : > { %v883_v10 = vpop.eup %882  ;;  %v552_v11 = vsub.f32 %v1082_v2, %v1091_v9 }
 0x157   : > { %559 = vadd.xlane.f32.xlu0 %v883_v10  ;;  %v589_v18 = vmul.f32 %v883_v10, %v541_v16 }
 0x158   : > { %v885_v13 = vpop.eup %884  ;;  %v557_v14 = vmul.f32 1.442695, %v552_v11 }
 0x159   : > { %561 = vadd.xlane.f32.xlu1 %v885_v13  ;;  %v590_v19 = vmul.f32 %v885_v13, %v542_v17 }
 0x15a   : > { %886 = vpow2.f32 %v557_v14 }
 0x15b   : > { %888 = vlog2.f32 %v541_v16 }
 0x15f   : > { %592 = vadd.xlane.f32.xlu0 %v589_v18 }
 0x160   : > { %v887_v20 = vpop.eup %886 }
 0x161   : > { %594 = vadd.xlane.f32.xlu1 %v590_v19  ;;  %563 = vadd.xlane.f32.xlu2 %v887_v20  ;;  %v591_v23 = vmul.f32 %v887_v20, %v543_v22  ;;  %v889_v26 = vpop.eup %888 }
 0x162   : > { %v578_v32 = vmul.f32 0.6931472, %v889_v26 }
 0x169   : > { %596 = vadd.xlane.f32.xlu2 %v591_v23 }
 0x1ca   : > { %v560_v24 = vpop.xlane.xlu0 %559 }
 0x1cb   : > { %890 = vlog2.f32 %v560_v24 }
 0x1cc   : > { %892 = vlog2.f32 %v542_v17  ;;  %v562_v25 = vpop.xlane.xlu1 %561 }
 0x1cd   : > { %894 = vlog2.f32 %v562_v25 }
 0x1d1   : > { %v891_v27 = vpop.eup %890 }
 0x1d2   : > { %v893_v28 = vpop.eup %892  ;;  %v566_v29 = vmul.f32 0.6931472, %v891_v27  ;;  %v593_v30 = vpop.xlane.xlu0 %592 }
 0x1d3   : > { %v895_v31 = vpop.eup %894  ;;  %896 = vrcp.f32 %v593_v30  ;;  %v580_v37 = vmul.f32 0.6931472, %v893_v28 }
 0x1d4   : > { %898 = vlog2.f32 %v543_v22  ;;  %v571_v33 = vadd.f32 %v566_v29, %v545_v3  ;;  %v568_v34 = vmul.f32 0.6931472, %v895_v31  ;;  %v595_v35 = vpop.xlane.xlu1 %594  ;;  %v564_v36 = vpop.xlane.xlu2 %563 }
 0x1d5   : > { %900 = vrcp.f32 %v595_v35 }
 0x1d6   : > { %v574_v38 = vsub.f32 %v1076_v62, %v571_v33  ;;  %v572_v39 = vadd.f32 %v568_v34, %v547_v5  ;;  %902 = vlog2.f32 %v564_v36 }
 0x1d8   : > { %v583_v40 = vadd.f32 %v578_v32, %v574_v38  ;;  %v575_v41 = vsub.f32 %v1079_v0, %v572_v39 }
 0x1d9   : > { %v897_v42 = vpop.eup %896 }
 0x1da   : > { %v899_v43 = vpop.eup %898  ;;  %586 = vst [vmem:[%s305_s6] sm:$0xff] %v583_v40  ;;  %v584_v44 = vadd.f32 %v580_v37, %v575_v41  ;;  %v601_v45 = vmul.f32 %v897_v42, %v589_v18 }
 0x1db   : > { %v901_v46 = vpop.eup %900  ;;  %v582_v51 = vmul.f32 0.6931472, %v899_v43 }
 0x1dc   : > { %v903_v47 = vpop.eup %902  ;;  %587 = vst [vmem:[%s305_s6 + $0x8] sm:$0xff] %v584_v44  ;;  %v602_v48 = vmul.f32 %v901_v46, %v590_v19  ;;  %v597_v49 = vpop.xlane.xlu2 %596 }
 0x1dd   : > { %604 = vst [vmem:[%s315_s9] sm:$0xff] %v601_v45  ;;  %v570_v50 = vmul.f32 0.6931472, %v903_v47  ;;  %904 = vrcp.f32 %v597_v49 }
 0x1de   : > { %605 = vst [vmem:[%s315_s9 + $0x8] sm:$0xff] %v602_v48 }
 0x1df   : > { %v573_v52 = vadd.f32 %v570_v50, %v1091_v9 }
 0x1e1   : > { %v576_v53 = vsub.f32 %v1082_v2, %v573_v52 }
 0x1e3   : > { %v905_v54 = vpop.eup %904  ;;  %v585_v55 = vadd.f32 %v582_v51, %v576_v53 }
 0x1e4   : > { %v603_v56 = vmul.f32 %v905_v54, %v591_v23 }
 0x1e5   : > { %588 = vst [vmem:[%s305_s6 + $0x10] sm:$0xff] %v585_v55 }
 0x1e6   : > { %606 = vst [vmem:[%s315_s9 + $0x10] sm:$0xff] %v603_v56 }
 0x1e7 PF: > { %s15_s17 = sadd.s32 1, %s928_s17   ;;  %s1121_s15 = smov %s924_s16 }
 0x1e8   : > { %p12_p5 = scmp.ge.s32.totalorder %s15_s17, 4   ;;  %s1122_s16 = smov %s1124_s18 }
 0x1ea   :  { %14 = sbr.rel (!%p12_p5) target bundleno = 2 (0x2), region = 80 }

// kernel: aligner_device.4
= control target key start
LH: loop header
LB: loop body
LE: loop exit
PB: predicated region body
PF: predicated region fallthrough
CT: control target
= control target key end

     0   :  { %s1475_s24 = smov 0   ;;  %s1705_s0 = inlined_call_operand.vmem [shape: f32[2,24,16], index: 0, kind: input, shape index: {}]   ;;  %s1706_s1 = inlined_call_operand.vmem [shape: bf16[112,32], index: 1, kind: input, shape index: {}]   ;;  %s1707_s2 = inlined_call_operand.vmem [shape: f32[1,32], index: 2, kind: input, shape index: {}]   ;;  %s1708_s3 = inlined_call_operand.vmem [shape: bf16[224,32], index: 3, kind: input, shape index: {}]   ;;  %s1709_s4 = inlined_call_operand.vmem [shape: f32[1,32], index: 4, kind: input, shape index: {}]   ;;  %s1710_s5 = inlined_call_operand.vmem [shape: bf16[224,32], index: 5, kind: input, shape index: {}]   ;;  %s1711_s6 = inlined_call_operand.vmem [shape: f32[1,32], index: 6, kind: input, shape index: {}]   ;;  %s1712_s7 = inlined_call_operand.vmem [shape: f32[2,24,32], index: 7, kind: output, shape index: {}]  }
   0x1 LB: > { %s1105_s25 = sadd.s32 4294967295, %s1426_s24   ;;  %p1109_p0 = scmp.ge.s32.totalorder %s1426_s24, 1  ;;  %s1426_s24 = sphi %s1475_s24, %s17_s24  }
   0x2   : > { %p237_p1 = scmp.lt.s32.totalorder %s1426_s24, 3 }
   0x4   : > { %p238_p2 = pnand %p1109_p0, %p237_p1 }
   0x5   : > { %p269_p3 = scmp.lt.s32.totalorder (!%p238_p2), %s1105_s25, 1  ;;  %s1429_s13 = smov (!%p238_p2), 16  }
   0x6   : > { %241 = sbr.rel (%p238_p2) target bundleno = 876 (0x36c), region = 48  ;;  %s1430_s14 = smov (!%p238_p2), 48  }
   0x7   : > { %s1431_s15 = smov (!%p238_p2), 80   ;;  %s1432_s16 = smov (!%p238_p2), 32  }
   0x8   : > { %s1433_s17 = smov (!%p238_p2), 64   ;;  %s1434_s18 = smov (!%p238_p2), 96  }
   0xb   : > { %vm283_vm0 = vcmask 124928   ;;  %v1428_v0 = vmov 0.0   ;;  %s1714_s25 = smov (!%p269_p3, %s1105_s25), 1  ;;  %vm286_vm1 = vcmask 130048   ;;  %v1266_v4 = vld [vmem:[%s1706_s1 + $0x30] sm:$0xff]  ;;  %v1265_v9 = vld [vmem:[%s1706_s1 + $0x28] sm:$0xff] }
   0xc   : > { %284 = vst.msk [vmem:[#allocation2] sm:$0x7] %vm283_vm0, %v1428_v0  ;;  %s1301_s26 = smul.u32 24, %s1714_s25  ;;  %476 = vmatpush.bf16.msra.mxu0 %v1266_v4  ;;  %v1264_v12 = vld [vmem:[%s1706_s1 + $0x20] sm:$0xff]  ;;  %v1263_v31 = vld [vmem:[%s1706_s1 + $0x18] sm:$0xff]  ;;  %v1262_v32 = vld [vmem:[%s1706_s1 + $0x10] sm:$0xff] }
   0xd   : > { %285 = vst.msk [vmem:[#allocation2 + $0x1b] sm:$0x7] %vm283_vm0, %v1428_v0  ;;  %v1261_v33 = vld [vmem:[%s1706_s1 + $0x8] sm:$0xff]  ;;  %v1260_v34 = vld [vmem:[%s1706_s1] sm:$0xff]  ;;  %vm386_vm2 = vcmask 261120   ;;  %vm390_vm3 = vcmask 392192  }
   0xe   : > { %s273_s29 = scalar_lea.vmem %s1705_s0, %s1301_s26  ;;  %vm394_vm4 = vcmask 523264   ;;  %vm398_vm5 = vcmask 654336   ;;  %vm402_vm6 = vcmask 785408   ;;  %vm468_vm7 = vcmask 916480  }
   0xf   : > { %v280_v1 = vld [vmem:[%s273_s29] sm:$0xff]  ;;  %v281_v2 = vld [vmem:[%s273_s29 + $0x8] sm:$0xff]  ;;  %v282_v3 = vld [vmem:[%s273_s29 + $0x10] sm:$0xff]  ;;  %vm502_vm8 = vcmask 256000  }
  0x10   : > { %287 = vst.msk [vmem:[#allocation2 + $0x3] sm:$0xff] %vm286_vm1, %v280_v1  ;;  %477 = vmatpush.bf16.msra.mxu0 %v1265_v9 }
  0x11   : > { %288 = vst.msk [vmem:[#allocation2 + $0xb] sm:$0xff] %vm286_vm1, %v281_v2 }
  0x12   : > { %289 = vst.msk [vmem:[#allocation2 + $0x13] sm:$0xff] %vm286_vm1, %v282_v3 }
  0x13   : > { %503 = vst.msk [vmem:[#allocation3] sm:$0x7] %vm502_vm8, %v1428_v0 }
  0x14   : > { %478 = vmatpush.bf16.msra.mxu0 %v1264_v12  ;;  %504 = vst.msk [vmem:[#allocation3 + $0x1b] sm:$0x7] %vm502_vm8, %v1428_v0 }
  0x15   : > { %775 = vst.msk [vmem:[#allocation4] sm:$0x7] %vm502_vm8, %v1428_v0 }
  0x16   : > { %776 = vst.msk [vmem:[#allocation4 + $0x1b] sm:$0x7] %vm502_vm8, %v1428_v0 }
  0x17   : > { %v293_v5 = vld [vmem:[#allocation2 + $0x1] sm:$0xff] }
  0x18   : > { %v299_v6 = vld [vmem:[#allocation2 + $0x3] sm:$0xff]  ;;  %v300_v8 = vld [vmem:[#allocation2 + $0xb] sm:$0xff]  ;;  %479 = vmatpush.bf16.msra.mxu0 %v1263_v31 }
  0x19   : > { %v294_v7 = vld [vmem:[#allocation2 + $0x9] sm:$0xff]  ;;  %v1327_v11 = vpack.i.bf16 %v300_v8, %v299_v6  ;;  %v295_v25 = vld [vmem:[#allocation2 + $0x11] sm:$0xff]  ;;  %v290_v41 = vld [vmem:[#allocation2] sm:$0xff] }
  0x1a   : > { %v1317_v10 = vpack.i.bf16 %v294_v7, %v293_v5  ;;  %v296_v13 = vld [vmem:[#allocation2 + $0x2] sm:$0xff]  ;;  %v306_v15 = vld [vmem:[#allocation2 + $0xd] sm:$0xff]  ;;  %v307_v29 = vld [vmem:[#allocation2 + $0x15] sm:$0xff] }
  0x1b   : > { %1328 = vrot.lane.b32.xlu1 %v1327_v11, %s1430_s14  ;;  %v305_v14 = vld [vmem:[#allocation2 + $0x5] sm:$0xff]  ;;  %v309_v23 = vld [vmem:[#allocation2 + $0xe] sm:$0xff]  ;;  %v310_v30 = vld [vmem:[#allocation2 + $0x16] sm:$0xff] }
  0x1c   : > { %1318 = vrot.lane.b32.xlu0 %v1317_v10, %s1429_s13  ;;  %v297_v16 = vld [vmem:[#allocation2 + $0xa] sm:$0xff]  ;;  %v1337_v19 = vpack.i.bf16 %v306_v15, %v305_v14  ;;  %v298_v26 = vld [vmem:[#allocation2 + $0x12] sm:$0xff]  ;;  %480 = vmatpush.bf16.msra.mxu0 %v1262_v32 }
  0x1d   : > { %v302_v17 = vld [vmem:[#allocation2 + $0x4] sm:$0xff]  ;;  %v303_v18 = vld [vmem:[#allocation2 + $0xc] sm:$0xff]  ;;  %v1322_v20 = vpack.i.bf16 %v297_v16, %v296_v13  ;;  %v304_v28 = vld [vmem:[#allocation2 + $0x14] sm:$0xff] }
  0x1e   : > { %1338 = vrot.lane.b32.xlu2 %v1337_v19, %s1431_s15  ;;  %v1332_v21 = vpack.i.bf16 %v303_v18, %v302_v17  ;;  %v308_v22 = vld [vmem:[#allocation2 + $0x6] sm:$0xff]  ;;  %v301_v27 = vld [vmem:[#allocation2 + $0x13] sm:$0xff]  ;;  %v1417_v19 = vld [vmem:[%s1707_s2] ss:$0 sm:$0xff] }
  0x1f   : > { %v1342_v24 = vpack.i.bf16 %v309_v23, %v308_v22  ;;  %v291_v42 = vld [vmem:[#allocation2 + $0x8] sm:$0xff]  ;;  %v292_v63 = vld [vmem:[#allocation2 + $0x10] sm:$0xff] }
  0x20   : > { %481 = vmatpush.bf16.msra.mxu0 %v1261_v33 }
  0x23   : > { %1333 = vrot.lane.b32.xlu1 %v1332_v21, %s1433_s17 }
  0x24   : > { %1323 = vrot.lane.b32.xlu0 %v1322_v20, %s1432_s16  ;;  %482 = vmatpush.bf16.msra.mxu0 %v1260_v34 }
  0x26   : > { %1343 = vrot.lane.b32.xlu2 %v1342_v24, %s1434_s18 }
  0x2b   : > { %330 = vrot.lane.b32.xlu1 %v298_v26, %s1432_s16 }
  0x2c   : > { %318 = vrot.lane.b32.xlu0 %v295_v25, %s1429_s13 }
  0x2e   : > { %342 = vrot.lane.b32.xlu2 %v301_v27, %s1430_s14  ;;  %s278_s14 = scalar_lea.vmem %s1712_s7, %s1301_s26 }
  0x33   : > { %366 = vrot.lane.b32.xlu1 %v307_v29, %s1431_s15 }
  0x34   : > { %354 = vrot.lane.b32.xlu0 %v304_v28, %s1433_s17 }
  0x36   : > { %378 = vrot.lane.b32.xlu2 %v310_v30, %s1434_s18 }
  0x78   : > { %v1339_v35 = vpop.permute.xlu2 %1338 }
  0x79   : > { %v1341_v43 = vunpack.i.h.bf16 %v1339_v35  ;;  %v1340_v58 = vunpack.i.l.bf16 %v1339_v35 }
  0x80   : > { %v1344_v38 = vpop.permute.xlu2 %1343 }
  0x81   : > { %v1346_v56 = vunpack.i.h.bf16 %v1344_v38  ;;  %v1345_v57 = vunpack.i.l.bf16 %v1344_v38 }
  0x88   : > { %v343_v3 = vpop.permute.xlu2 %342 }
  0x8d   : > { %v1329_v37 = vpop.permute.xlu1 %1328 }
  0x8e   : > { %v1319_v36 = vpop.permute.xlu0 %1318  ;;  %v1331_v52 = vunpack.i.h.bf16 %v1329_v37  ;;  %v1330_v53 = vunpack.i.l.bf16 %v1329_v37 }
  0x8f   : > { %v1321_v39 = vunpack.i.h.bf16 %v1319_v36  ;;  %v1320_v40 = vunpack.i.l.bf16 %v1319_v36 }
  0x90   : > { %v379_v16 = vpop.permute.xlu2 %378 }
  0x91   : > { %v383_v50 = vsel %vm286_vm1, %v290_v41, %v1320_v40  ;;  %v384_v51 = vsel %vm286_vm1, %v291_v42, %v1321_v39 }
  0x95   : > { %v1334_v45 = vpop.permute.xlu1 %1333 }
  0x96   : > { %v1324_v44 = vpop.permute.xlu0 %1323  ;;  %v1336_v48 = vunpack.i.h.bf16 %v1334_v45  ;;  %v1335_v49 = vunpack.i.l.bf16 %v1334_v45 }
  0x97   : > { %v1326_v46 = vunpack.i.h.bf16 %v1324_v44  ;;  %v1325_v47 = vunpack.i.l.bf16 %v1324_v44 }
  0x99   : > { %v387_v54 = vsel %vm386_vm2, %v383_v50, %v1325_v47  ;;  %v388_v55 = vsel %vm386_vm2, %v384_v51, %v1326_v46 }
  0x9a   : > { %v391_v59 = vsel %vm390_vm3, %v387_v54, %v1330_v53  ;;  %v392_v60 = vsel %vm390_vm3, %v388_v55, %v1331_v52  ;;  %v1274_v54 = vld [vmem:[%s1708_s3 + $0x38] sm:$0xff]  ;;  %v1280_v55 = vld [vmem:[%s1708_s3 + $0x68] sm:$0xff] }
  0x9b   : > { %v395_v61 = vsel %vm394_vm4, %v391_v59, %v1335_v49  ;;  %v396_v62 = vsel %vm394_vm4, %v392_v60, %v1336_v48  ;;  %730 = vmatpush.bf16.msra.mxu1 %v1274_v54  ;;  %750 = vmatpush.bf16.msra.mxu2 %v1280_v55  ;;  %v1278_v59 = vld [vmem:[%s1708_s3 + $0x58] sm:$0xff]  ;;  %v1271_v60 = vld [vmem:[%s1708_s3 + $0x20] sm:$0xff] }
  0x9c   : > { %v399_v1 = vsel %vm398_vm5, %v395_v61, %v1340_v58  ;;  %v400_v2 = vsel %vm398_vm5, %v396_v62, %v1341_v43  ;;  %v1272_v58 = vld [vmem:[%s1708_s3 + $0x28] sm:$0xff]  ;;  %v1277_v61 = vld [vmem:[%s1708_s3 + $0x50] sm:$0xff]  ;;  %v1270_v62 = vld [vmem:[%s1708_s3 + $0x18] sm:$0xff] }
  0x9d   : > { %v403_v4 = vsel %vm402_vm6, %v399_v1, %v1345_v57  ;;  %v404_v5 = vsel %vm402_vm6, %v400_v2, %v1346_v56  ;;  %v331_v7 = vpop.permute.xlu1 %330  ;;  %v1273_v56 = vld [vmem:[%s1708_s3 + $0x30] sm:$0xff]  ;;  %v1279_v57 = vld [vmem:[%s1708_s3 + $0x60] sm:$0xff] }
  0x9e   : > { %v319_v6 = vpop.permute.xlu0 %318  ;;  %v406_v8 = vpack.c.bf16 %v404_v5, %v403_v4  ;;  %v1269_v1 = vld [vmem:[%s1708_s3 + $0x10] sm:$0xff]  ;;  %v1275_v2 = vld [vmem:[%s1708_s3 + $0x40] sm:$0xff] }
  0x9f   : > { %v385_v9 = vsel %vm286_vm1, %v292_v63, %v319_v6  ;;  %731 = vmatpush.bf16.msra.mxu1 %v1273_v56  ;;  %751 = vmatpush.bf16.msra.mxu2 %v1279_v57  ;;  %v1276_v63 = vld [vmem:[%s1708_s3 + $0x48] sm:$0xff]  ;;  %v1267_v4 = vld [vmem:[%s1708_s3] sm:$0xff] }
  0xa0   : > { %1140 = vmatmul.msk.bf16.vlgmr.msra.gmra.mxu0 %vm468_vm7, %v406_v8  ;;  %v389_v10 = vsel %vm386_vm2, %v385_v9, %v331_v7 }
  0xa1   : > { %v393_v11 = vsel %vm390_vm3, %v389_v10, %v343_v3  ;;  %v1268_v3 = vld [vmem:[%s1708_s3 + $0x8] sm:$0xff] }
  0xa3   : > { %732 = vmatpush.bf16.msra.mxu1 %v1272_v58  ;;  %752 = vmatpush.bf16.msra.mxu2 %v1278_v59 }
  0xa5   : > { %v367_v13 = vpop.permute.xlu1 %366 }
  0xa6   : > { %v355_v12 = vpop.permute.xlu0 %354 }
  0xa7   : > { %v397_v14 = vsel %vm394_vm4, %v393_v11, %v355_v12  ;;  %733 = vmatpush.bf16.msra.mxu1 %v1271_v60  ;;  %753 = vmatpush.bf16.msra.mxu2 %v1277_v61 }
  0xa8   : > { %v401_v15 = vsel %vm398_vm5, %v397_v14, %v367_v13 }
  0xa9   : > { %v405_v17 = vsel %vm402_vm6, %v401_v15, %v379_v16 }
  0xaa   : > { %v407_v18 = vpack.c.bf16 %v405_v17, %v405_v17 }
  0xab   : > { %734 = vmatpush.bf16.msra.mxu1 %v1270_v62  ;;  %754 = vmatpush.bf16.msra.mxu2 %v1276_v63  ;;  %v1288_v62 = vld [vmem:[%s1710_s5 + $0x38] sm:$0xff] }
  0xac   : > { %1002 = vmatpush.bf16.msra.mxu3 %v1288_v62 }
  0xaf   : > { %735 = vmatpush.bf16.msra.mxu1 %v1269_v1  ;;  %755 = vmatpush.bf16.msra.mxu2 %v1275_v2 }
  0xb0   : > { %1141 = vmatmul.msk.bf16.gmra.mxu0 %vm468_vm7, %v407_v18 }
  0xb3   : > { %736 = vmatpush.bf16.msra.mxu1 %v1268_v3 }
  0xb7   : > { %737 = vmatpush.bf16.msra.mxu1 %v1267_v4 }
 0x11d   : > { %v484_v20 = vpop.f32.mrf.mxu0 }
 0x11e   : > { %v485_v21 = vadd.f32 %v1417_v19, %v484_v20 }
 0x120   : > { %vm493_vm9 = vcmp.ge.f32.partialorder %v485_v21, 0.0  ;;  %v496_v22 = vmul.f32 0.3, %v485_v21 }
 0x122   : > { %v499_v23 = vsel %vm493_vm9, %v485_v21, %v496_v22 }
 0x123   : > { %505 = vst.msk [vmem:[#allocation3 + $0x3] sm:$0xff] %vm386_vm2, %v499_v23 }
 0x125   : > { %v486_v24 = vpop.f32.mrf.mxu0 }
 0x126   : > { %v487_v25 = vadd.f32 %v1417_v19, %v486_v24 }
 0x128   : > { %vm494_vm10 = vcmp.ge.f32.partialorder %v487_v25, 0.0  ;;  %v497_v26 = vmul.f32 0.3, %v487_v25 }
 0x12a   : > { %v500_v27 = vsel %vm494_vm10, %v487_v25, %v497_v26  ;;  %v511_v31 = vld [vmem:[#allocation3 + $0x1] sm:$0xff] }
 0x12b   : > { %506 = vst.msk [vmem:[#allocation3 + $0xb] sm:$0xff] %vm386_vm2, %v500_v27  ;;  %v517_v46 = vld [vmem:[#allocation3 + $0x3] sm:$0xff] }
 0x12c   : > { %v514_v47 = vld [vmem:[#allocation3 + $0x2] sm:$0xff] }
 0x12d   : > { %v489_v28 = vpop.f32.mrf.mxu0  ;;  %v508_v23 = vld [vmem:[#allocation3] sm:$0xff] }
 0x12e   : > { %v490_v0 = vadd.f32 %v1417_v19, %v489_v28 }
 0x130   : > { %vm495_vm11 = vcmp.ge.f32.partialorder %v490_v0, 0.0  ;;  %v498_v29 = vmul.f32 0.3, %v490_v0 }
 0x132   : > { %v501_v30 = vsel %vm495_vm11, %v490_v0, %v498_v29  ;;  %v512_v32 = vld [vmem:[#allocation3 + $0x9] sm:$0xff] }
 0x133   : > { %507 = vst.msk [vmem:[#allocation3 + $0x13] sm:$0xff] %vm386_vm2, %v501_v30  ;;  %v1347_v33 = vpack.i.bf16 %v512_v32, %v511_v31  ;;  %v526_v35 = vld [vmem:[#allocation3 + $0x6] sm:$0xff] }
 0x134   : > { %v523_v36 = vld [vmem:[#allocation3 + $0x5] sm:$0xff] }
 0x135   : > { %v491_v34 = vpop.f32.mrf.mxu0  ;;  %1348 = vrot.lane.b32.xlu2 %v1347_v33, %s1432_s16  ;;  %v518_v44 = vld [vmem:[#allocation3 + $0xb] sm:$0xff] }
 0x136   : > { %v515_v45 = vld [vmem:[#allocation3 + $0xa] sm:$0xff]  ;;  %v1367_v48 = vpack.i.bf16 %v518_v44, %v517_v46 }
 0x137   : > { %v1357_v49 = vpack.i.bf16 %v515_v45, %v514_v47  ;;  %v520_v13 = vld [vmem:[#allocation3 + $0x4] sm:$0xff] }
 0x138   : > { %v509_v24 = vld [vmem:[#allocation3 + $0x8] sm:$0xff] }
 0x13a   : > { %v527_v37 = vld [vmem:[#allocation3 + $0xe] sm:$0xff]  ;;  %v528_v51 = vld [vmem:[#allocation3 + $0x16] sm:$0xff] }
 0x13b   : > { %v524_v38 = vld [vmem:[#allocation3 + $0xd] sm:$0xff]  ;;  %v1362_v40 = vpack.i.bf16 %v527_v37, %v526_v35  ;;  %v525_v42 = vld [vmem:[#allocation3 + $0x15] sm:$0xff] }
 0x13c   : > { %v513_v39 = vld [vmem:[#allocation3 + $0x11] sm:$0xff]  ;;  %v1352_v41 = vpack.i.bf16 %v524_v38, %v523_v36 }
 0x13d   : > { %v1372_v43 = vpack.i.bf16 %v513_v39, %v525_v42  ;;  %1363 = vrot.lane.b32.xlu1 %v1362_v40, %s1433_s17  ;;  %v516_v50 = vld [vmem:[#allocation3 + $0x12] sm:$0xff] }
 0x13e   : > { %1353 = vrot.lane.b32.xlu0 %v1352_v41, %s1432_s16  ;;  %v1377_v52 = vpack.i.bf16 %v516_v50, %v528_v51  ;;  %v519_v53 = vld [vmem:[#allocation3 + $0x13] sm:$0xff]  ;;  %v1418_v51 = vld [vmem:[%s1709_s4] ss:$0 sm:$0xff] }
 0x13f   : > { %1373 = vrot.lane.b32.xlu2 %v1372_v43, %s1432_s16  ;;  %v521_v12 = vld [vmem:[#allocation3 + $0xc] sm:$0xff]  ;;  %v522_v38 = vld [vmem:[#allocation3 + $0x14] sm:$0xff] }
 0x140   : > { %v510_v45 = vld [vmem:[#allocation3 + $0x10] sm:$0xff] }
 0x145   : > { %1368 = vrot.lane.b32.xlu1 %v1367_v48, %s1434_s18 }
 0x146   : > { %1358 = vrot.lane.b32.xlu0 %v1357_v49, %s1433_s17 }
 0x14d   : > { %560 = vrot.lane.b32.xlu1 %v519_v53, %s1434_s18 }
 0x14e   : > { %1378 = vrot.lane.b32.xlu0 %v1377_v52, %s1433_s17 }
 0x18f   : > { %v1349_v7 = vpop.permute.xlu2 %1348 }
 0x190   : > { %v1351_v19 = vunpack.i.h.bf16 %v1349_v7  ;;  %v1350_v20 = vunpack.i.l.bf16 %v1349_v7 }
 0x192   : > { %v589_v0 = vsel %vm386_vm2, %v508_v23, %v1350_v20  ;;  %v590_v29 = vsel %vm386_vm2, %v509_v24, %v1351_v19 }
 0x199   : > { %v1374_v30 = vpop.permute.xlu2 %1373 }
 0x19a   : > { %v1375_v36 = vunpack.i.l.bf16 %v1374_v30  ;;  %v1376_v40 = vunpack.i.h.bf16 %v1374_v30 }
 0x19c   : > { %v600_v41 = vsel %vm386_vm2, %v522_v38, %v1375_v36  ;;  %v591_v46 = vsel %vm386_vm2, %v510_v45, %v1376_v40  ;;  %v1293_v36 = vld [vmem:[%s1710_s5 + $0x60] sm:$0xff]  ;;  %v1282_v38 = vld [vmem:[%s1710_s5 + $0x8] sm:$0xff] }
 0x19d   : > { %v1281_v40 = vld [vmem:[%s1710_s5] sm:$0xff] }
 0x1af   : > { %v1364_v5 = vpop.permute.xlu1 %1363 }
 0x1b0   : > { %v1354_v6 = vpop.permute.xlu0 %1353  ;;  %v1366_v8 = vunpack.i.h.bf16 %v1364_v5  ;;  %v1365_v9 = vunpack.i.l.bf16 %v1364_v5 }
 0x1b1   : > { %v1356_v10 = vunpack.i.h.bf16 %v1354_v6  ;;  %v1355_v11 = vunpack.i.l.bf16 %v1354_v6 }
 0x1b3   : > { %v599_v14 = vsel %vm386_vm2, %v521_v12, %v1356_v10  ;;  %v598_v15 = vsel %vm386_vm2, %v520_v13, %v1355_v11 }
 0x1b4   : > { %v601_v16 = vsel %vm394_vm4, %v598_v15, %v1365_v9  ;;  %v602_v17 = vsel %vm394_vm4, %v599_v14, %v1366_v8 }
 0x1b5   : > { %v605_v18 = vpack.c.bf16 %v602_v17, %v601_v16 }
 0x1b7   : > { %1198 = vmatmul.msk.bf16.vlgmr.msra.gmra.mxu2 %vm402_vm6, %v605_v18  ;;  %v1369_v21 = vpop.permute.xlu1 %1368 }
 0x1b8   : > { %v1359_v22 = vpop.permute.xlu0 %1358  ;;  %v1371_v25 = vunpack.i.h.bf16 %v1369_v21  ;;  %v1370_v26 = vunpack.i.l.bf16 %v1369_v21 }
 0x1b9   : > { %v1361_v27 = vunpack.i.h.bf16 %v1359_v22  ;;  %v1360_v28 = vunpack.i.l.bf16 %v1359_v22 }
 0x1bb   : > { %v592_v31 = vsel %vm394_vm4, %v589_v0, %v1360_v28  ;;  %v593_v32 = vsel %vm394_vm4, %v590_v29, %v1361_v27 }
 0x1bc   : > { %v595_v33 = vsel %vm402_vm6, %v592_v31, %v1370_v26  ;;  %v596_v34 = vsel %vm402_vm6, %v593_v32, %v1371_v25  ;;  %v1287_v31 = vld [vmem:[%s1710_s5 + $0x30] sm:$0xff]  ;;  %v1286_v32 = vld [vmem:[%s1710_s5 + $0x28] sm:$0xff] }
 0x1bd   : > { %v604_v35 = vpack.c.bf16 %v596_v34, %v595_v33  ;;  %1003 = vmatpush.bf16.msra.mxu3 %v1287_v31  ;;  %v1285_v33 = vld [vmem:[%s1710_s5 + $0x20] sm:$0xff]  ;;  %v1294_v34 = vld [vmem:[%s1710_s5 + $0x68] sm:$0xff] }
 0x1be   : > { %1022 = vmatpush.bf16.msrb.mxu0 %v1294_v34  ;;  %1295 = vmatpush.bf16.msrb.mxu2 %v1294_v34 }
 0x1bf   : > { %738 = vmatmul.bf16.vlgmr.msra.gmra.mxu1 %v604_v35  ;;  %v561_v48 = vpop.permute.xlu1 %560  ;;  %v1284_v35 = vld [vmem:[%s1710_s5 + $0x18] sm:$0xff] }
 0x1c0   : > { %v1379_v37 = vpop.permute.xlu0 %1378 }
 0x1c1   : > { %v1380_v39 = vunpack.i.l.bf16 %v1379_v37  ;;  %v1381_v42 = vunpack.i.h.bf16 %v1379_v37  ;;  %1004 = vmatpush.bf16.msra.mxu3 %v1286_v32  ;;  %v1283_v37 = vld [vmem:[%s1710_s5 + $0x10] sm:$0xff] }
 0x1c2   : > { %1023 = vmatpush.bf16.msrb.mxu0 %v1293_v36  ;;  %1296 = vmatpush.bf16.msrb.mxu2 %v1293_v36 }
 0x1c3   : > { %v603_v43 = vsel %vm394_vm4, %v600_v41, %v1380_v39  ;;  %v594_v47 = vsel %vm394_vm4, %v591_v46, %v1381_v42  ;;  %v1292_v39 = vld [vmem:[%s1710_s5 + $0x58] sm:$0xff]  ;;  %v1291_v41 = vld [vmem:[%s1710_s5 + $0x50] sm:$0xff]  ;;  %v1290_v42 = vld [vmem:[%s1710_s5 + $0x48] sm:$0xff] }
 0x1c4   : > { %v607_v44 = vpack.c.bf16 %v603_v43, %v603_v43  ;;  %v597_v49 = vsel %vm402_vm6, %v594_v47, %v561_v48  ;;  %v1289_v43 = vld [vmem:[%s1710_s5 + $0x40] sm:$0xff] }
 0x1c5   : > { %v606_v50 = vpack.c.bf16 %v597_v49, %v597_v49  ;;  %1005 = vmatpush.bf16.msra.mxu3 %v1285_v33 }
 0x1c6   : > { %1024 = vmatpush.bf16.msrb.mxu0 %v1292_v39  ;;  %1297 = vmatpush.bf16.msrb.mxu2 %v1292_v39 }
 0x1c7   : > { %1199 = vmatmul.msk.bf16.gmra.mxu2 %vm402_vm6, %v607_v44 }
 0x1c9   : > { %1006 = vmatpush.bf16.msra.mxu3 %v1284_v35 }
 0x1ca   : > { %1025 = vmatpush.bf16.msrb.mxu0 %v1291_v41  ;;  %1298 = vmatpush.bf16.msrb.mxu2 %v1291_v41 }
 0x1cd   : > { %1007 = vmatpush.bf16.msra.mxu3 %v1283_v37 }
 0x1ce   : > { %1026 = vmatpush.bf16.msrb.mxu0 %v1290_v42  ;;  %1299 = vmatpush.bf16.msrb.mxu2 %v1290_v42 }
 0x1cf   : > { %743 = vmatmul.bf16.gmra.mxu1 %v606_v50 }
 0x1d1   : > { %1008 = vmatpush.bf16.msra.mxu3 %v1282_v38 }
 0x1d2   : > { %1027 = vmatpush.bf16.msrb.mxu0 %v1289_v43  ;;  %1300 = vmatpush.bf16.msrb.mxu2 %v1289_v43 }
 0x1d5   : > { %1009 = vmatpush.bf16.msra.mxu3 %v1281_v40 }
 0x23a   : > { %v757_v52 = vpop.f32.mrf.mxu2 }
 0x23c   : > { %v739_v53 = vpop.f32.mrf.mxu1 }
 0x23d   : > { %v740_v54 = vadd.f32 %v1418_v51, %v739_v53 }
 0x23f   : > { %v758_v55 = vadd.f32 %v757_v52, %v740_v54 }
 0x241   : > { %vm766_vm12 = vcmp.ge.f32.partialorder %v758_v55, 0.0  ;;  %v769_v56 = vmul.f32 0.3, %v758_v55 }
 0x242   : > { %v759_v57 = vpop.f32.mrf.mxu2 }
 0x243   : > { %v772_v58 = vsel %vm766_vm12, %v758_v55, %v769_v56 }
 0x244   : > { %777 = vst.msk [vmem:[#allocation4 + $0x3] sm:$0xff] %vm386_vm2, %v772_v58  ;;  %v741_v59 = vpop.f32.mrf.mxu1 }
 0x245   : > { %v742_v60 = vadd.f32 %v1418_v51, %v741_v59 }
 0x247   : > { %v760_v61 = vadd.f32 %v759_v57, %v742_v60 }
 0x249   : > { %vm767_vm13 = vcmp.ge.f32.partialorder %v760_v61, 0.0  ;;  %v770_v63 = vmul.f32 0.3, %v760_v61 }
 0x24a   : > { %v762_v1 = vpop.f32.mrf.mxu2 }
 0x24b   : > { %v773_v2 = vsel %vm767_vm13, %v760_v61, %v770_v63  ;;  %v789_v8 = vld [vmem:[#allocation4 + $0x3] sm:$0xff] }
 0x24c   : > { %778 = vst.msk [vmem:[#allocation4 + $0xb] sm:$0xff] %vm386_vm2, %v773_v2  ;;  %v744_v3 = vpop.f32.mrf.mxu1  ;;  %v786_v9 = vld [vmem:[#allocation4 + $0x2] sm:$0xff] }
 0x24d   : > { %v745_v4 = vadd.f32 %v1418_v51, %v744_v3  ;;  %v783_v10 = vld [vmem:[#allocation4 + $0x1] sm:$0xff] }
 0x24e   : > { %v780_v49 = vld [vmem:[#allocation4] sm:$0xff] }
 0x24f   : > { %v763_v5 = vadd.f32 %v762_v1, %v745_v4 }
 0x251   : > { %vm768_vm14 = vcmp.ge.f32.partialorder %v763_v5, 0.0  ;;  %v771_v6 = vmul.f32 0.3, %v763_v5 }
 0x252   : > { %v764_v7 = vpop.f32.mrf.mxu2 }
 0x253   : > { %v774_v11 = vsel %vm768_vm14, %v763_v5, %v771_v6  ;;  %v790_v12 = vld [vmem:[#allocation4 + $0xb] sm:$0xff] }
 0x254   : > { %v787_v13 = vld [vmem:[#allocation4 + $0xa] sm:$0xff]  ;;  %779 = vst.msk [vmem:[#allocation4 + $0x13] sm:$0xff] %vm386_vm2, %v774_v11  ;;  %v746_v15 = vpop.f32.mrf.mxu1  ;;  %v1392_v16 = vpack.i.bf16 %v790_v12, %v789_v8 }
 0x255   : > { %v784_v14 = vld [vmem:[#allocation4 + $0x9] sm:$0xff]  ;;  %v1387_v17 = vpack.i.bf16 %v787_v13, %v786_v9 }
 0x256   : > { %v1382_v18 = vpack.i.bf16 %v784_v14, %v783_v10  ;;  %1393 = vrot.lane.b32.xlu1 %v1392_v16, %s1434_s18  ;;  %v798_v19 = vld [vmem:[#allocation4 + $0x6] sm:$0xff] }
 0x257   : > { %1388 = vrot.lane.b32.xlu0 %v1387_v17, %s1433_s17  ;;  %v795_v26 = vld [vmem:[#allocation4 + $0x5] sm:$0xff] }
 0x258   : > { %1383 = vrot.lane.b32.xlu2 %v1382_v18, %s1432_s16  ;;  %v781_v50 = vld [vmem:[#allocation4 + $0x8] sm:$0xff] }
 0x259   : > { %v792_v12 = vld [vmem:[#allocation4 + $0x4] sm:$0xff] }
 0x25b   : > { %v796_v20 = vld [vmem:[#allocation4 + $0xd] sm:$0xff]  ;;  %v797_v21 = vld [vmem:[#allocation4 + $0x15] sm:$0xff] }
 0x25c   : > { %v788_v22 = vld [vmem:[#allocation4 + $0x12] sm:$0xff]  ;;  %v1407_v23 = vpack.i.bf16 %v797_v21, %v796_v20 }
 0x25d   : > { %v1402_v24 = vpack.i.bf16 %v798_v19, %v788_v22  ;;  %v785_v25 = vld [vmem:[#allocation4 + $0x11] sm:$0xff] }
 0x25e   : > { %v1397_v27 = vpack.i.bf16 %v795_v26, %v785_v25  ;;  %1408 = vrot.lane.b32.xlu1 %v1407_v23, %s1432_s16  ;;  %v799_v28 = vld [vmem:[#allocation4 + $0xe] sm:$0xff]  ;;  %v800_v0 = vld [vmem:[#allocation4 + $0x16] sm:$0xff] }
 0x25f   : > { %1403 = vrot.lane.b32.xlu0 %v1402_v24, %s1433_s17  ;;  %v1412_v29 = vpack.i.bf16 %v800_v0, %v799_v28  ;;  %v791_v30 = vld [vmem:[#allocation4 + $0x13] sm:$0xff]  ;;  %v1419_v0 = vld [vmem:[%s1711_s6] ss:$0 sm:$0xff] }
 0x260   : > { %1398 = vrot.lane.b32.xlu2 %v1397_v27, %s1432_s16  ;;  %v782_v4 = vld [vmem:[#allocation4 + $0x10] sm:$0xff] }
 0x261   : > { %v793_v14 = vld [vmem:[#allocation4 + $0xc] sm:$0xff]  ;;  %v794_v15 = vld [vmem:[#allocation4 + $0x14] sm:$0xff] }
 0x267   : > { %1413 = vrot.lane.b32.xlu0 %v1412_v29, %s1433_s17 }
 0x268   : > { %832 = vrot.lane.b32.xlu2 %v791_v30, %s1434_s18 }
 0x2b2   : > { %v1384_v44 = vpop.permute.xlu2 %1383 }
 0x2b3   : > { %v1386_v45 = vunpack.i.h.bf16 %v1384_v44  ;;  %v1385_v46 = vunpack.i.l.bf16 %v1384_v44 }
 0x2b5   : > { %v861_v55 = vsel %vm386_vm2, %v780_v49, %v1385_v46  ;;  %v862_v56 = vsel %vm386_vm2, %v781_v50, %v1386_v45 }
 0x2ba   : > { %v1399_v62 = vpop.permute.xlu2 %1398 }
 0x2bb   : > { %v1400_v1 = vunpack.i.l.bf16 %v1399_v62  ;;  %v1401_v5 = vunpack.i.h.bf16 %v1399_v62 }
 0x2bd   : > { %v863_v8 = vsel %vm386_vm2, %v782_v4, %v1400_v1  ;;  %v870_v18 = vsel %vm386_vm2, %v792_v12, %v1401_v5 }
 0x2c2   : > { %v833_v13 = vpop.permute.xlu2 %832 }
 0x2c8   : > { %v1394_v47 = vpop.permute.xlu1 %1393 }
 0x2c9   : > { %v1389_v48 = vpop.permute.xlu0 %1388  ;;  %v1396_v51 = vunpack.i.h.bf16 %v1394_v47  ;;  %v1395_v52 = vunpack.i.l.bf16 %v1394_v47 }
 0x2ca   : > { %v1391_v53 = vunpack.i.h.bf16 %v1389_v48  ;;  %v1390_v54 = vunpack.i.l.bf16 %v1389_v48 }
 0x2cc   : > { %v864_v57 = vsel %vm394_vm4, %v861_v55, %v1390_v54  ;;  %v865_v58 = vsel %vm394_vm4, %v862_v56, %v1391_v53 }
 0x2cd   : > { %v867_v59 = vsel %vm402_vm6, %v864_v57, %v1395_v52  ;;  %v868_v60 = vsel %vm402_vm6, %v865_v58, %v1396_v51 }
 0x2ce   : > { %v876_v61 = vpack.c.bf16 %v868_v60, %v867_v59 }
 0x2d0   : > { %1010 = vmatmul.bf16.vlgmr.msra.gmra.mxu3 %v876_v61  ;;  %v1409_v2 = vpop.permute.xlu1 %1408 }
 0x2d1   : > { %v1404_v63 = vpop.permute.xlu0 %1403  ;;  %v1411_v6 = vunpack.i.h.bf16 %v1409_v2  ;;  %v1410_v7 = vunpack.i.l.bf16 %v1409_v2 }
 0x2d2   : > { %v1405_v3 = vunpack.i.l.bf16 %v1404_v63  ;;  %v1406_v9 = vunpack.i.h.bf16 %v1404_v63 }
 0x2d3   : > { %v872_v19 = vsel %vm386_vm2, %v794_v15, %v1411_v6  ;;  %v871_v20 = vsel %vm386_vm2, %v793_v14, %v1410_v7 }
 0x2d4   : > { %v866_v10 = vsel %vm394_vm4, %v863_v8, %v1405_v3  ;;  %v873_v22 = vsel %vm394_vm4, %v870_v18, %v1406_v9 }
 0x2d5   : > { %v869_v21 = vsel %vm402_vm6, %v866_v10, %v833_v13 }
 0x2d6   : > { %v878_v27 = vpack.c.bf16 %v869_v21, %v869_v21 }
 0x2d9   : > { %v1414_v11 = vpop.permute.xlu0 %1413 }
 0x2da   : > { %v1416_v16 = vunpack.i.h.bf16 %v1414_v11  ;;  %v1415_v17 = vunpack.i.l.bf16 %v1414_v11 }
 0x2dc   : > { %v875_v23 = vsel %vm394_vm4, %v872_v19, %v1416_v16  ;;  %v874_v24 = vsel %vm394_vm4, %v871_v20, %v1415_v17 }
 0x2dd   : > { %v879_v25 = vpack.c.bf16 %v875_v23, %v875_v23  ;;  %v877_v26 = vpack.c.bf16 %v874_v24, %v873_v22 }
 0x2df   : > { %1256 = vmatmul.msk.bf16.vlgmr.msrb.gmra.mxu0 %vm402_vm6, %v877_v26  ;;  %1257 = vmatmul.msk.bf16.vlgmr.msrb.gmra.mxu2 %vm402_vm6, %v879_v25 }
 0x2e0   : > { %1015 = vmatmul.bf16.gmra.mxu3 %v878_v27 }
 0x353   : > { %v1011_v28 = vpop.f32.mrf.mxu3 }
 0x354   : > { %v1012_v29 = vadd.f32 %v1419_v0, %v1011_v28 }
 0x35b   : > { %v1013_v30 = vpop.f32.mrf.mxu3 }
 0x35c   : > { %v1029_v31 = vpop.f32.mrf.mxu0  ;;  %v1014_v36 = vadd.f32 %v1419_v0, %v1013_v30 }
 0x35d   : > { %v1030_v32 = vadd.f32 %v1029_v31, %v1012_v29 }
 0x35f   : > { %vm1038_vm15 = vcmp.ge.f32.partialorder %v1030_v32, 0.0  ;;  %v1041_v33 = vmul.f32 0.3, %v1030_v32 }
 0x361   : > { %v1044_v34 = vsel %vm1038_vm15, %v1030_v32, %v1041_v33 }
 0x362   : > { %1047 = vst.msk [vmem:[%s278_s14] sm:$0xff] %vm386_vm2, %v1044_v34  ;;  %v1034_v35 = vpop.f32.mrf.mxu2 }
 0x363   : > { %v1016_v37 = vpop.f32.mrf.mxu3 }
 0x364   : > { %v1017_v38 = vadd.f32 %v1419_v0, %v1016_v37  ;;  %v1031_v39 = vpop.f32.mrf.mxu0 }
 0x365   : > { %v1032_v40 = vadd.f32 %v1031_v39, %v1014_v36 }
 0x366   : > { %v1035_v41 = vadd.f32 %v1034_v35, %v1017_v38 }
 0x367   : > { %vm1039_vm0 = vcmp.ge.f32.partialorder %v1032_v40, 0.0  ;;  %v1042_v42 = vmul.f32 0.3, %v1032_v40 }
 0x368   : > { %vm1040_vm1 = vcmp.ge.f32.partialorder %v1035_v41, 0.0  ;;  %v1043_v43 = vmul.f32 0.3, %v1035_v41 }
 0x369   : > { %v1045_v44 = vsel %vm1039_vm0, %v1032_v40, %v1042_v42 }
 0x36a   : > { %v1046_v45 = vsel %vm1040_vm1, %v1035_v41, %v1043_v43  ;;  %1048 = vst.msk [vmem:[%s278_s14 + $0x8] sm:$0xff] %vm386_vm2, %v1045_v44  ;;  %v1036_v46 = vpop.f32.mrf.mxu2 }
 0x36b   : > { %1049 = vst.msk [vmem:[%s278_s14 + $0x10] sm:$0xff] %vm386_vm2, %v1046_v45  ;;  %v1018_v47 = vpop.f32.mrf.mxu3 }
 0x36c PF: > { %s17_s24 = sadd.s32 1, %s1426_s24  }
 0x36d   : > { %p14_p4 = scmp.ge.s32.totalorder %s17_s24, 4  }
 0x36f   :  { %16 = sbr.rel (!%p14_p4) target bundleno = 1 (0x1), region = 78 }

</bundles_post_ra>
